<compile_context>
chip_gen: v7x
topology: tpu7x:2x2x1
jax: 0.10.0
libtpu: 0.0.40
codegen_flags: <defaults>
</compile_context>

<pallas_src>
import functools

import jax
import jax.numpy as jnp
from jax.experimental import pallas as pl
from jax.experimental.pallas import tpu as pltpu


# Raised scoped-VMEM limit: enough for 512x1024 tiles w/ double buffering on
# v5e/v6e, still comfortably inside v7x's 64 MiB physical VMEM.
VMEM_LIMIT = 32 * 1024 * 1024


# ----------------------------- tiled linear kernels -----------------------------

def _linear_kernel(x_ref, w_ref, b_ref, o_ref, acc_ref, *, activation):
    """out = act(x @ W + b); bf16 MXU inputs, K-axis accumulated in f32 VMEM."""
    @pl.when(pl.program_id(2) == 0)
    def _init():
        acc_ref[...] = jnp.zeros_like(acc_ref)

    # x/w arrive in bf16 already (no per-step cast in the inner loop).
    acc_ref[...] += jnp.dot(x_ref[...], w_ref[...],
                            preferred_element_type=jnp.float32)

    @pl.when(pl.program_id(2) == pl.num_programs(2) - 1)
    def _finalize():
        y = acc_ref[...] + b_ref[...]
        if activation == "relu":
            y = jnp.maximum(y, 0.0)
        o_ref[...] = y.astype(o_ref.dtype)


def _linear_add_ln_kernel(x_ref, w_ref, b_ref, r_ref, g_ref, bt_ref, o_ref,
                          acc_ref, *, eps):
    """out = LayerNorm((x @ W + b) + residual) * gamma + beta  (fused epilogue)."""
    @pl.when(pl.program_id(1) == 0)
    def _init():
        acc_ref[...] = jnp.zeros_like(acc_ref)

    acc_ref[...] += jnp.dot(x_ref[...], w_ref[...],
                            preferred_element_type=jnp.float32)

    @pl.when(pl.program_id(1) == pl.num_programs(1) - 1)
    def _finalize():
        h = acc_ref[...] + b_ref[...] + r_ref[...].astype(jnp.float32)
        mean = jnp.mean(h, axis=-1, keepdims=True)
        c = h - mean
        var = jnp.mean(c * c, axis=-1, keepdims=True)   # biased var, like PyTorch
        y = c * jax.lax.rsqrt(var + eps) * g_ref[...] + bt_ref[...]
        o_ref[...] = y.astype(o_ref.dtype)


# ----------------------------- fused attention kernel -----------------------------

def _attn_block_kernel(x_ref, wqkv_ref, bqkv_ref, wo_ref, bo_ref, g_ref, bt_ref,
                       o_ref, *, heads, head_dim, scale, eps):
    """One batch: fused QKV projection + causal MHA + out-proj + residual + LN.

    TODO(synk): for large S this holds the full (S, 3E) QKV block / (S,S) scores
    per head in VMEM; a flash-style KV-blocked variant is needed for long
    sequences on v7x (64 MiB VMEM).
    TODO(synk): head_dim here is E/heads = 4, so QK^T / P.V contractions are
    inherently narrow and per-head tiles lane-sparse; with head_dim >= 128 the
    head loop should switch to lane-dense batched-head dots and a single wide
    out-projection matmul.
    """
    E = heads * head_dim
    S = x_ref.shape[1]
    x = x_ref[0]                                                   # (S, E) bf16

    # Fused QKV projection: one wide matmul (contraction E, output 3E) — no
    # HBM staging tensor between kernels.
    qkv = jnp.dot(x, wqkv_ref[...],
                  preferred_element_type=jnp.float32) + bqkv_ref[...]   # (S, 3E) f32

    # In-kernel causal mask (no HBM mask tensor).
    row = jax.lax.broadcasted_iota(jnp.int32, (S, S), 0)
    col = jax.lax.broadcasted_iota(jnp.int32, (S, S), 1)
    causal = col <= row
    neg = jnp.float32(-1e20 * scale)        # masked_fill(-1e20) then /sqrt(E)

    out = jnp.zeros((S, E), jnp.float32)
    for h in range(heads):                  # static unroll over heads
        lo = h * head_dim
        qh = (qkv[:, lo:lo + head_dim] * scale).astype(jnp.bfloat16)   # pre-scaled q
        kh = qkv[:, E + lo:E + lo + head_dim].astype(jnp.bfloat16)
        vh = qkv[:, 2 * E + lo:2 * E + lo + head_dim].astype(jnp.bfloat16)

        s = jax.lax.dot_general(qh, kh, (((1,), (1,)), ((), ())),
                                preferred_element_type=jnp.float32)    # (S, S)
        s = jnp.where(causal, s, neg)
        s = s - jnp.max(s, axis=-1, keepdims=True)
        p = jnp.exp(s)
        p = p * pl.reciprocal(jnp.sum(p, axis=-1, keepdims=True), approx=True)

        ctx = jnp.dot(p.astype(jnp.bfloat16), vh,
                      preferred_element_type=jnp.float32)              # (S, D)
        # Out-projection accumulated per head (wo_ref[h] is a cheap leading-dim
        # read of the (H, D, E) weight block); equivalent to concat(ctx_h) @ Wo.
        out = out + jnp.dot(ctx.astype(jnp.bfloat16), wo_ref[h],
                            preferred_element_type=jnp.float32)

    # residual add + LayerNorm epilogue (dropout = identity in eval mode)
    h2 = out + bo_ref[...] + x.astype(jnp.float32)
    mean = jnp.mean(h2, axis=-1, keepdims=True)
    c = h2 - mean
    var = jnp.mean(c * c, axis=-1, keepdims=True)
    y = c * jax.lax.rsqrt(var + eps) * g_ref[...] + bt_ref[...]
    o_ref[0] = y.astype(o_ref.dtype)


# ----------------------------- kernel wrappers -----------------------------

def _pick_tile(dim, pref, align):
    """Largest tile <= pref that is a multiple of `align` and divides `dim`,
    falling back to the full dimension (always legal on TPU)."""
    if dim <= pref:
        return dim
    t = (pref // align) * align
    while t >= align:
        if dim % t == 0:
            return t
        t -= align
    return dim


def _split_rows_for_dual_tc(M, tm):
    """Ensure >=2 blocks along the leading 'parallel' axis so v7x's two
    TensorCores both get work (no-op cost on single-TC v5e/v6e)."""
    if M // tm < 2 and M >= 16 and M % 8 == 0:
        return _pick_tile(M, M // 2, 8)
    return tm


def linear(x, w, b, activation=None, out_dtype=jnp.bfloat16,
           tm=512, tn=1024, tk=512):
    """y = act(x @ W + b), bf16 in / bf16 (or f32) out, f32 accumulation."""
    M, K = x.shape
    Nout = w.shape[1]
    tm = _split_rows_for_dual_tc(M, _pick_tile(M, tm, 8))
    tn = _pick_tile(Nout, tn, 128)
    tk = _pick_tile(K, tk, 128)
    grid = (M // tm, Nout // tn, K // tk)

    # Deeper buffering on the streamed weight tile only when the K loop is
    # actually deep enough to benefit (hides exposed DMA behind short compute).
    if K // tk >= 3:
        w_spec = pl.BlockSpec((tk, tn), lambda i, j, k: (k, j),
                              pipeline_mode=pl.Buffered(3))
    else:
        w_spec = pl.BlockSpec((tk, tn), lambda i, j, k: (k, j))

    return pl.pallas_call(
        functools.partial(_linear_kernel, activation=activation),
        out_shape=jax.ShapeDtypeStruct((M, Nout), out_dtype),
        grid=grid,
        in_specs=[
            pl.BlockSpec((tm, tk), lambda i, j, k: (i, k)),
            w_spec,
            pl.BlockSpec((1, tn), lambda i, j, k: (0, j)),
        ],
        out_specs=pl.BlockSpec((tm, tn), lambda i, j, k: (i, j)),
        scratch_shapes=[pltpu.VMEM((tm, tn), jnp.float32)],
        compiler_params=pltpu.CompilerParams(
            dimension_semantics=("parallel", "parallel", "arbitrary"),
            vmem_limit_bytes=VMEM_LIMIT),
    )(x, w, b.reshape(1, Nout))


def linear_add_layernorm(x, w, b, residual, gamma, beta, eps=1e-5, tm=512, tk=512):
    """y = LayerNorm(x @ W + b + residual) with the epilogue fused into the matmul."""
    M, K = x.shape
    Nout = w.shape[1]          # LN epilogue needs the full feature width per tile
    tm = _split_rows_for_dual_tc(M, _pick_tile(M, tm, 8))
    tk = _pick_tile(K, tk, 128)
    grid = (M // tm, K // tk)

    if K // tk >= 3:
        w_spec = pl.BlockSpec((tk, Nout), lambda i, k: (k, 0),
                              pipeline_mode=pl.Buffered(3))
    else:
        w_spec = pl.BlockSpec((tk, Nout), lambda i, k: (k, 0))

    return pl.pallas_call(
        functools.partial(_linear_add_ln_kernel, eps=eps),
        out_shape=jax.ShapeDtypeStruct((M, Nout), jnp.bfloat16),
        grid=grid,
        in_specs=[
            pl.BlockSpec((tm, tk), lambda i, k: (i, k)),
            w_spec,
            pl.BlockSpec((1, Nout), lambda i, k: (0, 0)),
            pl.BlockSpec((tm, Nout), lambda i, k: (i, 0)),
            pl.BlockSpec((1, Nout), lambda i, k: (0, 0)),
            pl.BlockSpec((1, Nout), lambda i, k: (0, 0)),
        ],
        out_specs=pl.BlockSpec((tm, Nout), lambda i, k: (i, 0)),
        scratch_shapes=[pltpu.VMEM((tm, Nout), jnp.float32)],
        compiler_params=pltpu.CompilerParams(
            dimension_semantics=("parallel", "arbitrary"),
            vmem_limit_bytes=VMEM_LIMIT),
    )(x, w, b.reshape(1, Nout), residual,
      gamma.reshape(1, Nout), beta.reshape(1, Nout))


def attention_ln_block(x, ap, gamma, beta, heads, scale, eps=1e-5):
    """LN(SelfAttention(x, x, x, causal_mask) + x) in ONE pallas_call:
    QKV projection, per-head causal attention, out-projection, residual and
    LayerNorm all fused (no HBM staging of QKV)."""
    N, S, E = x.shape
    hd = E // heads
    # TODO(synk): with E=32 the (1,S,E) out block is lane-sparse (32/128 lanes);
    # padding E would change LayerNorm statistics, so it is kept at model width.
    return pl.pallas_call(
        functools.partial(_attn_block_kernel, heads=heads, head_dim=hd,
                          scale=scale, eps=eps),
        out_shape=jax.ShapeDtypeStruct((N, S, E), jnp.bfloat16),
        grid=(N,),
        in_specs=[
            pl.BlockSpec((1, S, E), lambda b: (b, 0, 0)),       # x (residual + input)
            pl.BlockSpec((E, 3 * E), lambda b: (0, 0)),         # fused QKV weight
            pl.BlockSpec((1, 3 * E), lambda b: (0, 0)),         # fused QKV bias
            pl.BlockSpec((heads, hd, E), lambda b: (0, 0, 0)),  # Wo, head-split
            pl.BlockSpec((1, E), lambda b: (0, 0)),             # bo
            pl.BlockSpec((1, E), lambda b: (0, 0)),             # gamma
            pl.BlockSpec((1, E), lambda b: (0, 0)),             # beta
        ],
        out_specs=pl.BlockSpec((1, S, E), lambda b: (b, 0, 0)),
        compiler_params=pltpu.CompilerParams(
            dimension_semantics=("parallel",),
            vmem_limit_bytes=VMEM_LIMIT),
    )(x, ap["w_qkv"], ap["b_qkv"].reshape(1, 3 * E), ap["wo"],
      ap["bo"].reshape(1, E), gamma.reshape(1, E), beta.reshape(1, E))


# ----------------------------- model (glue in JAX) -----------------------------

def transformer_forward(params, trg, cfg):
    N, S = trg.shape
    E, H = cfg["E"], cfg["heads"]
    scale = 1.0 / (E ** 0.5)        # reference divides scores by sqrt(embeddingSize)

    tok = jnp.take(params["tok_emb"], trg, axis=0)           # (N, S, E) gather
    pos = params["pos_emb"][:S][None, :, :]                  # (1, S, E)
    # bf16 activations everywhere between kernels (MXU-native, half HBM traffic).
    x = (tok + pos).astype(jnp.bfloat16)

    for lp in params["layers"]:
        # DecoderBlock: LN(selfattn(x) + x)
        x = attention_ln_block(x, lp["attn"], lp["g"], lp["b"], H, scale)
        tb = lp["tblock"]
        # TransformerBlock attention: LN1(selfattn(x) + x)
        x = attention_ln_block(x, tb["attn"], tb["g1"], tb["b1"], H, scale)
        # Feed-forward with fused residual + LN2 epilogue
        x2 = x.reshape(-1, E)
        h = linear(x2, tb["w1"], tb["bl1"], activation="relu")
        x = linear_add_layernorm(h, tb["w2"], tb["bl2"], x2,
                                 tb["g2"], tb["b2"]).reshape(N, S, E)

    logits = linear(x.reshape(-1, E), params["w_fc"], params["b_fc"],
                    out_dtype=jnp.float32)
    vpad = params["w_fc"].shape[1]
    return logits.reshape(N, S, vpad)[..., :cfg["vocab"]]


# ----------------------------- deterministic params -----------------------------

def _dense(key, din, dout):
    # PyTorch-style (out, in) init, transposed to (in, out); weights bf16 for the
    # MXU / halved HBM traffic, biases stay f32 (added post-accumulation).
    w = jax.random.normal(key, (dout, din), jnp.float32) * 0.05
    b = jnp.zeros((dout,), jnp.float32)
    return w.T.astype(jnp.bfloat16), b


def _attn_params(key, E, heads):
    hd = E // heads
    ks = jax.random.split(key, 4)
    wq, bq = _dense(ks[0], E, E)
    wk, bk = _dense(ks[1], E, E)
    wv, bv = _dense(ks[2], E, E)
    wo, bo = _dense(ks[3], E, E)
    return dict(
        w_qkv=jnp.concatenate([wq, wk, wv], axis=1),   # (E, 3E) bf16, fused QKV
        b_qkv=jnp.concatenate([bq, bk, bv], axis=0),   # (3E,)  f32
        wo=wo.reshape(heads, hd, E),                   # (H, D, E) bf16
        bo=bo,                                         # (E,)   f32
    )


def init_params(key, vocab, E, heads, num_layers, lin_dim, max_len):
    keys = jax.random.split(key, 3 + num_layers)
    params = {
        "tok_emb": jax.random.normal(keys[0], (vocab, E), jnp.float32) * 0.05,
        "pos_emb": jax.random.normal(keys[1], (max_len, E), jnp.float32) * 0.05,
        "layers": [],
    }
    for li in range(num_layers):
        lk = jax.random.split(keys[3 + li], 4)
        w1, bl1 = _dense(lk[2], E, lin_dim * E)
        w2, bl2 = _dense(lk[3], lin_dim * E, E)
        params["layers"].append(dict(
            attn=_attn_params(lk[0], E, heads),
            g=jnp.ones((E,), jnp.float32), b=jnp.zeros((E,), jnp.float32),
            tblock=dict(
                attn=_attn_params(lk[1], E, heads),
                g1=jnp.ones((E,), jnp.float32), b1=jnp.zeros((E,), jnp.float32),
                g2=jnp.ones((E,), jnp.float32), b2=jnp.zeros((E,), jnp.float32),
                w1=w1, bl1=bl1, w2=w2, bl2=bl2,
            ),
        ))
    # Final projection padded so the logits tile's last dim is a lane multiple (128);
    # the extra zero-weight columns are sliced away after the kernel.
    w_fc, b_fc = _dense(keys[2], E, vocab)
    vpad = ((vocab + 127) // 128) * 128
    params["w_fc"] = jnp.pad(w_fc, ((0, 0), (0, vpad - vocab)))
    params["b_fc"] = jnp.pad(b_fc, ((0, vpad - vocab),))
    return params


# ----------------------------- main -----------------------------

if __name__ == "__main__":
    cfg = dict(vocab=50, E=32, heads=8, num_layers=2, lin_dim=4, max_len=16)

    key = jax.random.PRNGKey(0)
    pkey, dkey = jax.random.split(key)
    params = init_params(pkey, cfg["vocab"], cfg["E"], cfg["heads"],
                         cfg["num_layers"], cfg["lin_dim"], cfg["max_len"])

    N, S = 2, 8
    trg = jax.random.randint(dkey, (N, S), 0, cfg["vocab"], dtype=jnp.int32)

    fwd = jax.jit(functools.partial(transformer_forward, cfg=cfg))
    out = fwd(params, trg)
    out = jax.block_until_ready(out)
    assert out.shape == (N, S, cfg["vocab"])
    assert bool(jnp.all(jnp.isfinite(out)))
    print("KERNEL_OK")
</pallas_src>

<mosaic_0001>
module attributes {stable_mosaic.version = 11 : i64} {
  func.func @_attn_block_kernel(%arg0: i32, %arg1: memref<1x8x32xbf16, #tpu.memory_space<vmem>>, %arg2: memref<32x96xbf16, #tpu.memory_space<vmem>>, %arg3: memref<1x96xf32, #tpu.memory_space<vmem>>, %arg4: memref<8x4x32xbf16, #tpu.memory_space<vmem>>, %arg5: memref<1x32xf32, #tpu.memory_space<vmem>>, %arg6: memref<1x32xf32, #tpu.memory_space<vmem>>, %arg7: memref<1x32xf32, #tpu.memory_space<vmem>>, %arg8: memref<1x8x32xbf16, #tpu.memory_space<vmem>>) attributes {dimension_semantics = [#tpu.dimension_semantics<parallel>], iteration_bounds = array<i64: 2>, scalar_prefetch = 0 : i64, scratch_operands = 0 : i64, tpu.core_type = #tpu.core_type<tc>, window_params = [{transform_indices = @transform_0, window_bounds = array<i64: 1, 8, 32>}, {pipeline_mode = #tpu.pipeline_mode<synchronous>, transform_indices = @transform_1, window_bounds = array<i64: 32, 96>}, {pipeline_mode = #tpu.pipeline_mode<synchronous>, transform_indices = @transform_2, window_bounds = array<i64: 1, 96>}, {pipeline_mode = #tpu.pipeline_mode<synchronous>, transform_indices = @transform_3, window_bounds = array<i64: 8, 4, 32>}, {pipeline_mode = #tpu.pipeline_mode<synchronous>, transform_indices = @transform_4, window_bounds = array<i64: 1, 32>}, {pipeline_mode = #tpu.pipeline_mode<synchronous>, transform_indices = @transform_5, window_bounds = array<i64: 1, 32>}, {pipeline_mode = #tpu.pipeline_mode<synchronous>, transform_indices = @transform_6, window_bounds = array<i64: 1, 32>}, {transform_indices = @transform_7, window_bounds = array<i64: 1, 8, 32>}]} {
    %c0 = arith.constant 0 : index
    %c0_0 = arith.constant 0 : index
    %c0_1 = arith.constant 0 : index
    %0 = vector.load %arg1[%c0, %c0_0, %c0_1] : memref<1x8x32xbf16, #tpu.memory_space<vmem>>, vector<1x8x32xbf16>
    %1 = vector.shape_cast %0 : vector<1x8x32xbf16> to vector<8x32xbf16>
    %c0_2 = arith.constant 0 : index
    %c0_3 = arith.constant 0 : index
    %2 = vector.load %arg2[%c0_2, %c0_3] : memref<32x96xbf16, #tpu.memory_space<vmem>>, vector<32x96xbf16>
    %cst = arith.constant dense<0.000000e+00> : vector<8x96xf32>
    %3 = tpu.matmul %1, %2, %cst {dimension_numbers = #tpu.dot_dimension_numbers<[1], [0], [0], [1], [0, 0, 1, 1], [], []>} : vector<8x32xbf16>, vector<32x96xbf16>, vector<8x96xf32> -> vector<8x96xf32>
    %c0_4 = arith.constant 0 : index
    %c0_5 = arith.constant 0 : index
    %4 = vector.load %arg3[%c0_4, %c0_5] : memref<1x96xf32, #tpu.memory_space<vmem>>, vector<1x96xf32>
    %5 = vector.broadcast %4 : vector<1x96xf32> to vector<8x96xf32>
    %6 = arith.addf %3, %5 : vector<8x96xf32>
    %7 = tpu.iota {dimensions = array<i32: 0>} : vector<8x8xi32>
    %8 = tpu.iota {dimensions = array<i32: 1>} : vector<8x8xi32>
    %9 = arith.cmpi sle, %8, %7 : vector<8x8xi32>
    %cst_6 = arith.constant 0.000000e+00 : f32
    %10 = vector.broadcast %cst_6 : f32 to vector<8x32xf32>
    %11 = vector.extract_strided_slice %6 {offsets = [0, 0], sizes = [8, 4], strides = [1, 1]} : vector<8x96xf32> to vector<8x4xf32>
    %cst_7 = arith.constant 0.176776692 : f32
    %12 = vector.broadcast %cst_7 : f32 to vector<8x4xf32>
    %13 = arith.mulf %11, %12 : vector<8x4xf32>
    %14 = arith.truncf %13 : vector<8x4xf32> to vector<8x4xbf16>
    %15 = vector.extract_strided_slice %6 {offsets = [0, 32], sizes = [8, 4], strides = [1, 1]} : vector<8x96xf32> to vector<8x4xf32>
    %16 = arith.truncf %15 : vector<8x4xf32> to vector<8x4xbf16>
    %17 = vector.extract_strided_slice %6 {offsets = [0, 64], sizes = [8, 4], strides = [1, 1]} : vector<8x96xf32> to vector<8x4xf32>
    %18 = arith.truncf %17 : vector<8x4xf32> to vector<8x4xbf16>
    %cst_8 = arith.constant dense<0.000000e+00> : vector<8x8xf32>
    %19 = tpu.matmul %14, %16, %cst_8 {dimension_numbers = #tpu.dot_dimension_numbers<[1], [1], [0], [0], [0, 0, 1, 0], [], []>} : vector<8x4xbf16>, vector<8x4xbf16>, vector<8x8xf32> -> vector<8x8xf32>
    %cst_9 = arith.constant -1.76776698E+19 : f32
    %20 = vector.broadcast %cst_9 : f32 to vector<8x8xf32>
    %21 = arith.select %9, %19, %20 : vector<8x8xi1>, vector<8x8xf32>
    %cst_10 = arith.constant dense<0xFF800000> : vector<8xf32>
    %22 = vector.multi_reduction <maximumf>, %21, %cst_10 [1] : vector<8x8xf32> to vector<8xf32>
    %23 = vector.shape_cast %22 : vector<8xf32> to vector<8x1xf32>
    %24 = vector.broadcast %23 : vector<8x1xf32> to vector<8x8xf32>
    %25 = arith.subf %21, %24 : vector<8x8xf32>
    %26 = math.exp %25 : vector<8x8xf32>
    %cst_11 = arith.constant dense<0.000000e+00> : vector<8xf32>
    %27 = vector.multi_reduction <add>, %26, %cst_11 [1] : vector<8x8xf32> to vector<8xf32>
    %28 = vector.shape_cast %27 : vector<8xf32> to vector<8x1xf32>
    %29 = tpu.reciprocal %28 {approx = true} : vector<8x1xf32> -> vector<8x1xf32>
    %30 = vector.broadcast %29 : vector<8x1xf32> to vector<8x8xf32>
    %31 = arith.mulf %26, %30 : vector<8x8xf32>
    %32 = arith.truncf %31 : vector<8x8xf32> to vector<8x8xbf16>
    %cst_12 = arith.constant dense<0.000000e+00> : vector<8x4xf32>
    %33 = tpu.matmul %32, %18, %cst_12 {dimension_numbers = #tpu.dot_dimension_numbers<[1], [0], [0], [1], [0, 0, 1, 1], [], []>} : vector<8x8xbf16>, vector<8x4xbf16>, vector<8x4xf32> -> vector<8x4xf32>
    %34 = arith.truncf %33 : vector<8x4xf32> to vector<8x4xbf16>
    %c0_13 = arith.constant 0 : index
    %c0_14 = arith.constant 0 : index
    %c0_15 = arith.constant 0 : index
    %35 = vector.load %arg4[%c0_13, %c0_14, %c0_15] : memref<8x4x32xbf16, #tpu.memory_space<vmem>>, vector<1x4x32xbf16>
    %36 = vector.shape_cast %35 : vector<1x4x32xbf16> to vector<4x32xbf16>
    %cst_16 = arith.constant dense<0.000000e+00> : vector<8x32xf32>
    %37 = tpu.matmul %34, %36, %cst_16 {dimension_numbers = #tpu.dot_dimension_numbers<[1], [0], [0], [1], [0, 0, 1, 1], [], []>} : vector<8x4xbf16>, vector<4x32xbf16>, vector<8x32xf32> -> vector<8x32xf32>
    %38 = arith.addf %10, %37 : vector<8x32xf32>
    %39 = vector.extract_strided_slice %6 {offsets = [0, 4], sizes = [8, 4], strides = [1, 1]} : vector<8x96xf32> to vector<8x4xf32>
    %cst_17 = arith.constant 0.176776692 : f32
    %40 = vector.broadcast %cst_17 : f32 to vector<8x4xf32>
    %41 = arith.mulf %39, %40 : vector<8x4xf32>
    %42 = arith.truncf %41 : vector<8x4xf32> to vector<8x4xbf16>
    %43 = vector.extract_strided_slice %6 {offsets = [0, 36], sizes = [8, 4], strides = [1, 1]} : vector<8x96xf32> to vector<8x4xf32>
    %44 = arith.truncf %43 : vector<8x4xf32> to vector<8x4xbf16>
    %45 = vector.extract_strided_slice %6 {offsets = [0, 68], sizes = [8, 4], strides = [1, 1]} : vector<8x96xf32> to vector<8x4xf32>
    %46 = arith.truncf %45 : vector<8x4xf32> to vector<8x4xbf16>
    %cst_18 = arith.constant dense<0.000000e+00> : vector<8x8xf32>
    %47 = tpu.matmul %42, %44, %cst_18 {dimension_numbers = #tpu.dot_dimension_numbers<[1], [1], [0], [0], [0, 0, 1, 0], [], []>} : vector<8x4xbf16>, vector<8x4xbf16>, vector<8x8xf32> -> vector<8x8xf32>
    %cst_19 = arith.constant -1.76776698E+19 : f32
    %48 = vector.broadcast %cst_19 : f32 to vector<8x8xf32>
    %49 = arith.select %9, %47, %48 : vector<8x8xi1>, vector<8x8xf32>
    %cst_20 = arith.constant dense<0xFF800000> : vector<8xf32>
    %50 = vector.multi_reduction <maximumf>, %49, %cst_20 [1] : vector<8x8xf32> to vector<8xf32>
    %51 = vector.shape_cast %50 : vector<8xf32> to vector<8x1xf32>
    %52 = vector.broadcast %51 : vector<8x1xf32> to vector<8x8xf32>
    %53 = arith.subf %49, %52 : vector<8x8xf32>
    %54 = math.exp %53 : vector<8x8xf32>
    %cst_21 = arith.constant dense<0.000000e+00> : vector<8xf32>
    %55 = vector.multi_reduction <add>, %54, %cst_21 [1] : vector<8x8xf32> to vector<8xf32>
    %56 = vector.shape_cast %55 : vector<8xf32> to vector<8x1xf32>
    %57 = tpu.reciprocal %56 {approx = true} : vector<8x1xf32> -> vector<8x1xf32>
    %58 = vector.broadcast %57 : vector<8x1xf32> to vector<8x8xf32>
    %59 = arith.mulf %54, %58 : vector<8x8xf32>
    %60 = arith.truncf %59 : vector<8x8xf32> to vector<8x8xbf16>
    %cst_22 = arith.constant dense<0.000000e+00> : vector<8x4xf32>
    %61 = tpu.matmul %60, %46, %cst_22 {dimension_numbers = #tpu.dot_dimension_numbers<[1], [0], [0], [1], [0, 0, 1, 1], [], []>} : vector<8x8xbf16>, vector<8x4xbf16>, vector<8x4xf32> -> vector<8x4xf32>
    %62 = arith.truncf %61 : vector<8x4xf32> to vector<8x4xbf16>
    %c1 = arith.constant 1 : index
    %c0_23 = arith.constant 0 : index
    %c0_24 = arith.constant 0 : index
    %63 = vector.load %arg4[%c1, %c0_23, %c0_24] : memref<8x4x32xbf16, #tpu.memory_space<vmem>>, vector<1x4x32xbf16>
    %64 = vector.shape_cast %63 : vector<1x4x32xbf16> to vector<4x32xbf16>
    %cst_25 = arith.constant dense<0.000000e+00> : vector<8x32xf32>
    %65 = tpu.matmul %62, %64, %cst_25 {dimension_numbers = #tpu.dot_dimension_numbers<[1], [0], [0], [1], [0, 0, 1, 1], [], []>} : vector<8x4xbf16>, vector<4x32xbf16>, vector<8x32xf32> -> vector<8x32xf32>
    %66 = arith.addf %38, %65 : vector<8x32xf32>
    %67 = vector.extract_strided_slice %6 {offsets = [0, 8], sizes = [8, 4], strides = [1, 1]} : vector<8x96xf32> to vector<8x4xf32>
    %cst_26 = arith.constant 0.176776692 : f32
    %68 = vector.broadcast %cst_26 : f32 to vector<8x4xf32>
    %69 = arith.mulf %67, %68 : vector<8x4xf32>
    %70 = arith.truncf %69 : vector<8x4xf32> to vector<8x4xbf16>
    %71 = vector.extract_strided_slice %6 {offsets = [0, 40], sizes = [8, 4], strides = [1, 1]} : vector<8x96xf32> to vector<8x4xf32>
    %72 = arith.truncf %71 : vector<8x4xf32> to vector<8x4xbf16>
    %73 = vector.extract_strided_slice %6 {offsets = [0, 72], sizes = [8, 4], strides = [1, 1]} : vector<8x96xf32> to vector<8x4xf32>
    %74 = arith.truncf %73 : vector<8x4xf32> to vector<8x4xbf16>
    %cst_27 = arith.constant dense<0.000000e+00> : vector<8x8xf32>
    %75 = tpu.matmul %70, %72, %cst_27 {dimension_numbers = #tpu.dot_dimension_numbers<[1], [1], [0], [0], [0, 0, 1, 0], [], []>} : vector<8x4xbf16>, vector<8x4xbf16>, vector<8x8xf32> -> vector<8x8xf32>
    %cst_28 = arith.constant -1.76776698E+19 : f32
    %76 = vector.broadcast %cst_28 : f32 to vector<8x8xf32>
    %77 = arith.select %9, %75, %76 : vector<8x8xi1>, vector<8x8xf32>
    %cst_29 = arith.constant dense<0xFF800000> : vector<8xf32>
    %78 = vector.multi_reduction <maximumf>, %77, %cst_29 [1] : vector<8x8xf32> to vector<8xf32>
    %79 = vector.shape_cast %78 : vector<8xf32> to vector<8x1xf32>
    %80 = vector.broadcast %79 : vector<8x1xf32> to vector<8x8xf32>
    %81 = arith.subf %77, %80 : vector<8x8xf32>
    %82 = math.exp %81 : vector<8x8xf32>
    %cst_30 = arith.constant dense<0.000000e+00> : vector<8xf32>
    %83 = vector.multi_reduction <add>, %82, %cst_30 [1] : vector<8x8xf32> to vector<8xf32>
    %84 = vector.shape_cast %83 : vector<8xf32> to vector<8x1xf32>
    %85 = tpu.reciprocal %84 {approx = true} : vector<8x1xf32> -> vector<8x1xf32>
    %86 = vector.broadcast %85 : vector<8x1xf32> to vector<8x8xf32>
    %87 = arith.mulf %82, %86 : vector<8x8xf32>
    %88 = arith.truncf %87 : vector<8x8xf32> to vector<8x8xbf16>
    %cst_31 = arith.constant dense<0.000000e+00> : vector<8x4xf32>
    %89 = tpu.matmul %88, %74, %cst_31 {dimension_numbers = #tpu.dot_dimension_numbers<[1], [0], [0], [1], [0, 0, 1, 1], [], []>} : vector<8x8xbf16>, vector<8x4xbf16>, vector<8x4xf32> -> vector<8x4xf32>
    %90 = arith.truncf %89 : vector<8x4xf32> to vector<8x4xbf16>
    %c2 = arith.constant 2 : index
    %c0_32 = arith.constant 0 : index
    %c0_33 = arith.constant 0 : index
    %91 = vector.load %arg4[%c2, %c0_32, %c0_33] : memref<8x4x32xbf16, #tpu.memory_space<vmem>>, vector<1x4x32xbf16>
    %92 = vector.shape_cast %91 : vector<1x4x32xbf16> to vector<4x32xbf16>
    %cst_34 = arith.constant dense<0.000000e+00> : vector<8x32xf32>
    %93 = tpu.matmul %90, %92, %cst_34 {dimension_numbers = #tpu.dot_dimension_numbers<[1], [0], [0], [1], [0, 0, 1, 1], [], []>} : vector<8x4xbf16>, vector<4x32xbf16>, vector<8x32xf32> -> vector<8x32xf32>
    %94 = arith.addf %66, %93 : vector<8x32xf32>
    %95 = vector.extract_strided_slice %6 {offsets = [0, 12], sizes = [8, 4], strides = [1, 1]} : vector<8x96xf32> to vector<8x4xf32>
    %cst_35 = arith.constant 0.176776692 : f32
    %96 = vector.broadcast %cst_35 : f32 to vector<8x4xf32>
    %97 = arith.mulf %95, %96 : vector<8x4xf32>
    %98 = arith.truncf %97 : vector<8x4xf32> to vector<8x4xbf16>
    %99 = vector.extract_strided_slice %6 {offsets = [0, 44], sizes = [8, 4], strides = [1, 1]} : vector<8x96xf32> to vector<8x4xf32>
    %100 = arith.truncf %99 : vector<8x4xf32> to vector<8x4xbf16>
    %101 = vector.extract_strided_slice %6 {offsets = [0, 76], sizes = [8, 4], strides = [1, 1]} : vector<8x96xf32> to vector<8x4xf32>
    %102 = arith.truncf %101 : vector<8x4xf32> to vector<8x4xbf16>
    %cst_36 = arith.constant dense<0.000000e+00> : vector<8x8xf32>
    %103 = tpu.matmul %98, %100, %cst_36 {dimension_numbers = #tpu.dot_dimension_numbers<[1], [1], [0], [0], [0, 0, 1, 0], [], []>} : vector<8x4xbf16>, vector<8x4xbf16>, vector<8x8xf32> -> vector<8x8xf32>
    %cst_37 = arith.constant -1.76776698E+19 : f32
    %104 = vector.broadcast %cst_37 : f32 to vector<8x8xf32>
    %105 = arith.select %9, %103, %104 : vector<8x8xi1>, vector<8x8xf32>
    %cst_38 = arith.constant dense<0xFF800000> : vector<8xf32>
    %106 = vector.multi_reduction <maximumf>, %105, %cst_38 [1] : vector<8x8xf32> to vector<8xf32>
    %107 = vector.shape_cast %106 : vector<8xf32> to vector<8x1xf32>
    %108 = vector.broadcast %107 : vector<8x1xf32> to vector<8x8xf32>
    %109 = arith.subf %105, %108 : vector<8x8xf32>
    %110 = math.exp %109 : vector<8x8xf32>
    %cst_39 = arith.constant dense<0.000000e+00> : vector<8xf32>
    %111 = vector.multi_reduction <add>, %110, %cst_39 [1] : vector<8x8xf32> to vector<8xf32>
    %112 = vector.shape_cast %111 : vector<8xf32> to vector<8x1xf32>
    %113 = tpu.reciprocal %112 {approx = true} : vector<8x1xf32> -> vector<8x1xf32>
    %114 = vector.broadcast %113 : vector<8x1xf32> to vector<8x8xf32>
    %115 = arith.mulf %110, %114 : vector<8x8xf32>
    %116 = arith.truncf %115 : vector<8x8xf32> to vector<8x8xbf16>
    %cst_40 = arith.constant dense<0.000000e+00> : vector<8x4xf32>
    %117 = tpu.matmul %116, %102, %cst_40 {dimension_numbers = #tpu.dot_dimension_numbers<[1], [0], [0], [1], [0, 0, 1, 1], [], []>} : vector<8x8xbf16>, vector<8x4xbf16>, vector<8x4xf32> -> vector<8x4xf32>
    %118 = arith.truncf %117 : vector<8x4xf32> to vector<8x4xbf16>
    %c3 = arith.constant 3 : index
    %c0_41 = arith.constant 0 : index
    %c0_42 = arith.constant 0 : index
    %119 = vector.load %arg4[%c3, %c0_41, %c0_42] : memref<8x4x32xbf16, #tpu.memory_space<vmem>>, vector<1x4x32xbf16>
    %120 = vector.shape_cast %119 : vector<1x4x32xbf16> to vector<4x32xbf16>
    %cst_43 = arith.constant dense<0.000000e+00> : vector<8x32xf32>
    %121 = tpu.matmul %118, %120, %cst_43 {dimension_numbers = #tpu.dot_dimension_numbers<[1], [0], [0], [1], [0, 0, 1, 1], [], []>} : vector<8x4xbf16>, vector<4x32xbf16>, vector<8x32xf32> -> vector<8x32xf32>
    %122 = arith.addf %94, %121 : vector<8x32xf32>
    %123 = vector.extract_strided_slice %6 {offsets = [0, 16], sizes = [8, 4], strides = [1, 1]} : vector<8x96xf32> to vector<8x4xf32>
    %cst_44 = arith.constant 0.176776692 : f32
    %124 = vector.broadcast %cst_44 : f32 to vector<8x4xf32>
    %125 = arith.mulf %123, %124 : vector<8x4xf32>
    %126 = arith.truncf %125 : vector<8x4xf32> to vector<8x4xbf16>
    %127 = vector.extract_strided_slice %6 {offsets = [0, 48], sizes = [8, 4], strides = [1, 1]} : vector<8x96xf32> to vector<8x4xf32>
    %128 = arith.truncf %127 : vector<8x4xf32> to vector<8x4xbf16>
    %129 = vector.extract_strided_slice %6 {offsets = [0, 80], sizes = [8, 4], strides = [1, 1]} : vector<8x96xf32> to vector<8x4xf32>
    %130 = arith.truncf %129 : vector<8x4xf32> to vector<8x4xbf16>
    %cst_45 = arith.constant dense<0.000000e+00> : vector<8x8xf32>
    %131 = tpu.matmul %126, %128, %cst_45 {dimension_numbers = #tpu.dot_dimension_numbers<[1], [1], [0], [0], [0, 0, 1, 0], [], []>} : vector<8x4xbf16>, vector<8x4xbf16>, vector<8x8xf32> -> vector<8x8xf32>
    %cst_46 = arith.constant -1.76776698E+19 : f32
    %132 = vector.broadcast %cst_46 : f32 to vector<8x8xf32>
    %133 = arith.select %9, %131, %132 : vector<8x8xi1>, vector<8x8xf32>
    %cst_47 = arith.constant dense<0xFF800000> : vector<8xf32>
    %134 = vector.multi_reduction <maximumf>, %133, %cst_47 [1] : vector<8x8xf32> to vector<8xf32>
    %135 = vector.shape_cast %134 : vector<8xf32> to vector<8x1xf32>
    %136 = vector.broadcast %135 : vector<8x1xf32> to vector<8x8xf32>
    %137 = arith.subf %133, %136 : vector<8x8xf32>
    %138 = math.exp %137 : vector<8x8xf32>
    %cst_48 = arith.constant dense<0.000000e+00> : vector<8xf32>
    %139 = vector.multi_reduction <add>, %138, %cst_48 [1] : vector<8x8xf32> to vector<8xf32>
    %140 = vector.shape_cast %139 : vector<8xf32> to vector<8x1xf32>
    %141 = tpu.reciprocal %140 {approx = true} : vector<8x1xf32> -> vector<8x1xf32>
    %142 = vector.broadcast %141 : vector<8x1xf32> to vector<8x8xf32>
    %143 = arith.mulf %138, %142 : vector<8x8xf32>
    %144 = arith.truncf %143 : vector<8x8xf32> to vector<8x8xbf16>
    %cst_49 = arith.constant dense<0.000000e+00> : vector<8x4xf32>
    %145 = tpu.matmul %144, %130, %cst_49 {dimension_numbers = #tpu.dot_dimension_numbers<[1], [0], [0], [1], [0, 0, 1, 1], [], []>} : vector<8x8xbf16>, vector<8x4xbf16>, vector<8x4xf32> -> vector<8x4xf32>
    %146 = arith.truncf %145 : vector<8x4xf32> to vector<8x4xbf16>
    %c4 = arith.constant 4 : index
    %c0_50 = arith.constant 0 : index
    %c0_51 = arith.constant 0 : index
    %147 = vector.load %arg4[%c4, %c0_50, %c0_51] : memref<8x4x32xbf16, #tpu.memory_space<vmem>>, vector<1x4x32xbf16>
    %148 = vector.shape_cast %147 : vector<1x4x32xbf16> to vector<4x32xbf16>
    %cst_52 = arith.constant dense<0.000000e+00> : vector<8x32xf32>
    %149 = tpu.matmul %146, %148, %cst_52 {dimension_numbers = #tpu.dot_dimension_numbers<[1], [0], [0], [1], [0, 0, 1, 1], [], []>} : vector<8x4xbf16>, vector<4x32xbf16>, vector<8x32xf32> -> vector<8x32xf32>
    %150 = arith.addf %122, %149 : vector<8x32xf32>
    %151 = vector.extract_strided_slice %6 {offsets = [0, 20], sizes = [8, 4], strides = [1, 1]} : vector<8x96xf32> to vector<8x4xf32>
    %cst_53 = arith.constant 0.176776692 : f32
    %152 = vector.broadcast %cst_53 : f32 to vector<8x4xf32>
    %153 = arith.mulf %151, %152 : vector<8x4xf32>
    %154 = arith.truncf %153 : vector<8x4xf32> to vector<8x4xbf16>
    %155 = vector.extract_strided_slice %6 {offsets = [0, 52], sizes = [8, 4], strides = [1, 1]} : vector<8x96xf32> to vector<8x4xf32>
    %156 = arith.truncf %155 : vector<8x4xf32> to vector<8x4xbf16>
    %157 = vector.extract_strided_slice %6 {offsets = [0, 84], sizes = [8, 4], strides = [1, 1]} : vector<8x96xf32> to vector<8x4xf32>
    %158 = arith.truncf %157 : vector<8x4xf32> to vector<8x4xbf16>
    %cst_54 = arith.constant dense<0.000000e+00> : vector<8x8xf32>
    %159 = tpu.matmul %154, %156, %cst_54 {dimension_numbers = #tpu.dot_dimension_numbers<[1], [1], [0], [0], [0, 0, 1, 0], [], []>} : vector<8x4xbf16>, vector<8x4xbf16>, vector<8x8xf32> -> vector<8x8xf32>
    %cst_55 = arith.constant -1.76776698E+19 : f32
    %160 = vector.broadcast %cst_55 : f32 to vector<8x8xf32>
    %161 = arith.select %9, %159, %160 : vector<8x8xi1>, vector<8x8xf32>
    %cst_56 = arith.constant dense<0xFF800000> : vector<8xf32>
    %162 = vector.multi_reduction <maximumf>, %161, %cst_56 [1] : vector<8x8xf32> to vector<8xf32>
    %163 = vector.shape_cast %162 : vector<8xf32> to vector<8x1xf32>
    %164 = vector.broadcast %163 : vector<8x1xf32> to vector<8x8xf32>
    %165 = arith.subf %161, %164 : vector<8x8xf32>
    %166 = math.exp %165 : vector<8x8xf32>
    %cst_57 = arith.constant dense<0.000000e+00> : vector<8xf32>
    %167 = vector.multi_reduction <add>, %166, %cst_57 [1] : vector<8x8xf32> to vector<8xf32>
    %168 = vector.shape_cast %167 : vector<8xf32> to vector<8x1xf32>
    %169 = tpu.reciprocal %168 {approx = true} : vector<8x1xf32> -> vector<8x1xf32>
    %170 = vector.broadcast %169 : vector<8x1xf32> to vector<8x8xf32>
    %171 = arith.mulf %166, %170 : vector<8x8xf32>
    %172 = arith.truncf %171 : vector<8x8xf32> to vector<8x8xbf16>
    %cst_58 = arith.constant dense<0.000000e+00> : vector<8x4xf32>
    %173 = tpu.matmul %172, %158, %cst_58 {dimension_numbers = #tpu.dot_dimension_numbers<[1], [0], [0], [1], [0, 0, 1, 1], [], []>} : vector<8x8xbf16>, vector<8x4xbf16>, vector<8x4xf32> -> vector<8x4xf32>
    %174 = arith.truncf %173 : vector<8x4xf32> to vector<8x4xbf16>
    %c5 = arith.constant 5 : index
    %c0_59 = arith.constant 0 : index
    %c0_60 = arith.constant 0 : index
    %175 = vector.load %arg4[%c5, %c0_59, %c0_60] : memref<8x4x32xbf16, #tpu.memory_space<vmem>>, vector<1x4x32xbf16>
    %176 = vector.shape_cast %175 : vector<1x4x32xbf16> to vector<4x32xbf16>
    %cst_61 = arith.constant dense<0.000000e+00> : vector<8x32xf32>
    %177 = tpu.matmul %174, %176, %cst_61 {dimension_numbers = #tpu.dot_dimension_numbers<[1], [0], [0], [1], [0, 0, 1, 1], [], []>} : vector<8x4xbf16>, vector<4x32xbf16>, vector<8x32xf32> -> vector<8x32xf32>
    %178 = arith.addf %150, %177 : vector<8x32xf32>
    %179 = vector.extract_strided_slice %6 {offsets = [0, 24], sizes = [8, 4], strides = [1, 1]} : vector<8x96xf32> to vector<8x4xf32>
    %cst_62 = arith.constant 0.176776692 : f32
    %180 = vector.broadcast %cst_62 : f32 to vector<8x4xf32>
    %181 = arith.mulf %179, %180 : vector<8x4xf32>
    %182 = arith.truncf %181 : vector<8x4xf32> to vector<8x4xbf16>
    %183 = vector.extract_strided_slice %6 {offsets = [0, 56], sizes = [8, 4], strides = [1, 1]} : vector<8x96xf32> to vector<8x4xf32>
    %184 = arith.truncf %183 : vector<8x4xf32> to vector<8x4xbf16>
    %185 = vector.extract_strided_slice %6 {offsets = [0, 88], sizes = [8, 4], strides = [1, 1]} : vector<8x96xf32> to vector<8x4xf32>
    %186 = arith.truncf %185 : vector<8x4xf32> to vector<8x4xbf16>
    %cst_63 = arith.constant dense<0.000000e+00> : vector<8x8xf32>
    %187 = tpu.matmul %182, %184, %cst_63 {dimension_numbers = #tpu.dot_dimension_numbers<[1], [1], [0], [0], [0, 0, 1, 0], [], []>} : vector<8x4xbf16>, vector<8x4xbf16>, vector<8x8xf32> -> vector<8x8xf32>
    %cst_64 = arith.constant -1.76776698E+19 : f32
    %188 = vector.broadcast %cst_64 : f32 to vector<8x8xf32>
    %189 = arith.select %9, %187, %188 : vector<8x8xi1>, vector<8x8xf32>
    %cst_65 = arith.constant dense<0xFF800000> : vector<8xf32>
    %190 = vector.multi_reduction <maximumf>, %189, %cst_65 [1] : vector<8x8xf32> to vector<8xf32>
    %191 = vector.shape_cast %190 : vector<8xf32> to vector<8x1xf32>
    %192 = vector.broadcast %191 : vector<8x1xf32> to vector<8x8xf32>
    %193 = arith.subf %189, %192 : vector<8x8xf32>
    %194 = math.exp %193 : vector<8x8xf32>
    %cst_66 = arith.constant dense<0.000000e+00> : vector<8xf32>
    %195 = vector.multi_reduction <add>, %194, %cst_66 [1] : vector<8x8xf32> to vector<8xf32>
    %196 = vector.shape_cast %195 : vector<8xf32> to vector<8x1xf32>
    %197 = tpu.reciprocal %196 {approx = true} : vector<8x1xf32> -> vector<8x1xf32>
    %198 = vector.broadcast %197 : vector<8x1xf32> to vector<8x8xf32>
    %199 = arith.mulf %194, %198 : vector<8x8xf32>
    %200 = arith.truncf %199 : vector<8x8xf32> to vector<8x8xbf16>
    %cst_67 = arith.constant dense<0.000000e+00> : vector<8x4xf32>
    %201 = tpu.matmul %200, %186, %cst_67 {dimension_numbers = #tpu.dot_dimension_numbers<[1], [0], [0], [1], [0, 0, 1, 1], [], []>} : vector<8x8xbf16>, vector<8x4xbf16>, vector<8x4xf32> -> vector<8x4xf32>
    %202 = arith.truncf %201 : vector<8x4xf32> to vector<8x4xbf16>
    %c6 = arith.constant 6 : index
    %c0_68 = arith.constant 0 : index
    %c0_69 = arith.constant 0 : index
    %203 = vector.load %arg4[%c6, %c0_68, %c0_69] : memref<8x4x32xbf16, #tpu.memory_space<vmem>>, vector<1x4x32xbf16>
    %204 = vector.shape_cast %203 : vector<1x4x32xbf16> to vector<4x32xbf16>
    %cst_70 = arith.constant dense<0.000000e+00> : vector<8x32xf32>
    %205 = tpu.matmul %202, %204, %cst_70 {dimension_numbers = #tpu.dot_dimension_numbers<[1], [0], [0], [1], [0, 0, 1, 1], [], []>} : vector<8x4xbf16>, vector<4x32xbf16>, vector<8x32xf32> -> vector<8x32xf32>
    %206 = arith.addf %178, %205 : vector<8x32xf32>
    %207 = vector.extract_strided_slice %6 {offsets = [0, 28], sizes = [8, 4], strides = [1, 1]} : vector<8x96xf32> to vector<8x4xf32>
    %cst_71 = arith.constant 0.176776692 : f32
    %208 = vector.broadcast %cst_71 : f32 to vector<8x4xf32>
    %209 = arith.mulf %207, %208 : vector<8x4xf32>
    %210 = arith.truncf %209 : vector<8x4xf32> to vector<8x4xbf16>
    %211 = vector.extract_strided_slice %6 {offsets = [0, 60], sizes = [8, 4], strides = [1, 1]} : vector<8x96xf32> to vector<8x4xf32>
    %212 = arith.truncf %211 : vector<8x4xf32> to vector<8x4xbf16>
    %213 = vector.extract_strided_slice %6 {offsets = [0, 92], sizes = [8, 4], strides = [1, 1]} : vector<8x96xf32> to vector<8x4xf32>
    %214 = arith.truncf %213 : vector<8x4xf32> to vector<8x4xbf16>
    %cst_72 = arith.constant dense<0.000000e+00> : vector<8x8xf32>
    %215 = tpu.matmul %210, %212, %cst_72 {dimension_numbers = #tpu.dot_dimension_numbers<[1], [1], [0], [0], [0, 0, 1, 0], [], []>} : vector<8x4xbf16>, vector<8x4xbf16>, vector<8x8xf32> -> vector<8x8xf32>
    %cst_73 = arith.constant -1.76776698E+19 : f32
    %216 = vector.broadcast %cst_73 : f32 to vector<8x8xf32>
    %217 = arith.select %9, %215, %216 : vector<8x8xi1>, vector<8x8xf32>
    %cst_74 = arith.constant dense<0xFF800000> : vector<8xf32>
    %218 = vector.multi_reduction <maximumf>, %217, %cst_74 [1] : vector<8x8xf32> to vector<8xf32>
    %219 = vector.shape_cast %218 : vector<8xf32> to vector<8x1xf32>
    %220 = vector.broadcast %219 : vector<8x1xf32> to vector<8x8xf32>
    %221 = arith.subf %217, %220 : vector<8x8xf32>
    %222 = math.exp %221 : vector<8x8xf32>
    %cst_75 = arith.constant dense<0.000000e+00> : vector<8xf32>
    %223 = vector.multi_reduction <add>, %222, %cst_75 [1] : vector<8x8xf32> to vector<8xf32>
    %224 = vector.shape_cast %223 : vector<8xf32> to vector<8x1xf32>
    %225 = tpu.reciprocal %224 {approx = true} : vector<8x1xf32> -> vector<8x1xf32>
    %226 = vector.broadcast %225 : vector<8x1xf32> to vector<8x8xf32>
    %227 = arith.mulf %222, %226 : vector<8x8xf32>
    %228 = arith.truncf %227 : vector<8x8xf32> to vector<8x8xbf16>
    %cst_76 = arith.constant dense<0.000000e+00> : vector<8x4xf32>
    %229 = tpu.matmul %228, %214, %cst_76 {dimension_numbers = #tpu.dot_dimension_numbers<[1], [0], [0], [1], [0, 0, 1, 1], [], []>} : vector<8x8xbf16>, vector<8x4xbf16>, vector<8x4xf32> -> vector<8x4xf32>
    %230 = arith.truncf %229 : vector<8x4xf32> to vector<8x4xbf16>
    %c7 = arith.constant 7 : index
    %c0_77 = arith.constant 0 : index
    %c0_78 = arith.constant 0 : index
    %231 = vector.load %arg4[%c7, %c0_77, %c0_78] : memref<8x4x32xbf16, #tpu.memory_space<vmem>>, vector<1x4x32xbf16>
    %232 = vector.shape_cast %231 : vector<1x4x32xbf16> to vector<4x32xbf16>
    %cst_79 = arith.constant dense<0.000000e+00> : vector<8x32xf32>
    %233 = tpu.matmul %230, %232, %cst_79 {dimension_numbers = #tpu.dot_dimension_numbers<[1], [0], [0], [1], [0, 0, 1, 1], [], []>} : vector<8x4xbf16>, vector<4x32xbf16>, vector<8x32xf32> -> vector<8x32xf32>
    %234 = arith.addf %206, %233 : vector<8x32xf32>
    %c0_80 = arith.constant 0 : index
    %c0_81 = arith.constant 0 : index
    %235 = vector.load %arg5[%c0_80, %c0_81] : memref<1x32xf32, #tpu.memory_space<vmem>>, vector<1x32xf32>
    %236 = vector.broadcast %235 : vector<1x32xf32> to vector<8x32xf32>
    %237 = arith.addf %234, %236 : vector<8x32xf32>
    %238 = arith.extf %1 : vector<8x32xbf16> to vector<8x32xf32>
    %239 = arith.addf %237, %238 : vector<8x32xf32>
    %cst_82 = arith.constant dense<0.000000e+00> : vector<8xf32>
    %240 = vector.multi_reduction <add>, %239, %cst_82 [1] : vector<8x32xf32> to vector<8xf32>
    %241 = vector.shape_cast %240 : vector<8xf32> to vector<8x1xf32>
    %cst_83 = arith.constant 3.200000e+01 : f32
    %242 = vector.broadcast %cst_83 : f32 to vector<8x1xf32>
    %243 = arith.divf %241, %242 : vector<8x1xf32>
    %244 = vector.broadcast %243 : vector<8x1xf32> to vector<8x32xf32>
    %245 = arith.subf %239, %244 : vector<8x32xf32>
    %246 = arith.mulf %245, %245 : vector<8x32xf32>
    %cst_84 = arith.constant dense<0.000000e+00> : vector<8xf32>
    %247 = vector.multi_reduction <add>, %246, %cst_84 [1] : vector<8x32xf32> to vector<8xf32>
    %248 = vector.shape_cast %247 : vector<8xf32> to vector<8x1xf32>
    %cst_85 = arith.constant 3.200000e+01 : f32
    %249 = vector.broadcast %cst_85 : f32 to vector<8x1xf32>
    %250 = arith.divf %248, %249 : vector<8x1xf32>
    %cst_86 = arith.constant 9.99999974E-6 : f32
    %251 = vector.broadcast %cst_86 : f32 to vector<8x1xf32>
    %252 = arith.addf %250, %251 : vector<8x1xf32>
    %253 = math.rsqrt %252 : vector<8x1xf32>
    %254 = vector.broadcast %253 : vector<8x1xf32> to vector<8x32xf32>
    %255 = arith.mulf %245, %254 : vector<8x32xf32>
    %c0_87 = arith.constant 0 : index
    %c0_88 = arith.constant 0 : index
    %256 = vector.load %arg6[%c0_87, %c0_88] : memref<1x32xf32, #tpu.memory_space<vmem>>, vector<1x32xf32>
    %257 = vector.broadcast %256 : vector<1x32xf32> to vector<8x32xf32>
    %258 = arith.mulf %255, %257 : vector<8x32xf32>
    %c0_89 = arith.constant 0 : index
    %c0_90 = arith.constant 0 : index
    %259 = vector.load %arg7[%c0_89, %c0_90] : memref<1x32xf32, #tpu.memory_space<vmem>>, vector<1x32xf32>
    %260 = vector.broadcast %259 : vector<1x32xf32> to vector<8x32xf32>
    %261 = arith.addf %258, %260 : vector<8x32xf32>
    %262 = arith.truncf %261 : vector<8x32xf32> to vector<8x32xbf16>
    %c0_91 = arith.constant 0 : index
    %c0_92 = arith.constant 0 : index
    %c0_93 = arith.constant 0 : index
    %263 = vector.load %arg8[%c0_91, %c0_92, %c0_93] : memref<1x8x32xbf16, #tpu.memory_space<vmem>>, vector<1x8x32xbf16>
    %264 = vector.shape_cast %263 : vector<1x8x32xbf16> to vector<8x32xbf16>
    %265 = vector.shape_cast %262 : vector<8x32xbf16> to vector<1x8x32xbf16>
    tpu.vector_store %arg8[%c0_91, %c0_92, %c0_93], %265 {strides = array<i32>} : memref<1x8x32xbf16, #tpu.memory_space<vmem>>, vector<1x8x32xbf16>,
    return
  }
  func.func @transform_0(%arg0: i32) -> (i32, i32, i32) {
    %c0_i32 = arith.constant 0 : i32
    %c0_i32_0 = arith.constant 0 : i32
    %c0_i32_1 = arith.constant 0 : i32
    return %arg0, %c0_i32, %c0_i32_0 : i32, i32, i32
  }
  func.func @transform_1(%arg0: i32) -> (i32, i32) {
    %c0_i32 = arith.constant 0 : i32
    %c0_i32_0 = arith.constant 0 : i32
    %c0_i32_1 = arith.constant 0 : i32
    return %c0_i32, %c0_i32_0 : i32, i32
  }
  func.func @transform_2(%arg0: i32) -> (i32, i32) {
    %c0_i32 = arith.constant 0 : i32
    %c0_i32_0 = arith.constant 0 : i32
    %c0_i32_1 = arith.constant 0 : i32
    return %c0_i32, %c0_i32_0 : i32, i32
  }
  func.func @transform_3(%arg0: i32) -> (i32, i32, i32) {
    %c0_i32 = arith.constant 0 : i32
    %c0_i32_0 = arith.constant 0 : i32
    %c0_i32_1 = arith.constant 0 : i32
    %c0_i32_2 = arith.constant 0 : i32
    return %c0_i32, %c0_i32_0, %c0_i32_1 : i32, i32, i32
  }
  func.func @transform_4(%arg0: i32) -> (i32, i32) {
    %c0_i32 = arith.constant 0 : i32
    %c0_i32_0 = arith.constant 0 : i32
    %c0_i32_1 = arith.constant 0 : i32
    return %c0_i32, %c0_i32_0 : i32, i32
  }
  func.func @transform_5(%arg0: i32) -> (i32, i32) {
    %c0_i32 = arith.constant 0 : i32
    %c0_i32_0 = arith.constant 0 : i32
    %c0_i32_1 = arith.constant 0 : i32
    return %c0_i32, %c0_i32_0 : i32, i32
  }
  func.func @transform_6(%arg0: i32) -> (i32, i32) {
    %c0_i32 = arith.constant 0 : i32
    %c0_i32_0 = arith.constant 0 : i32
    %c0_i32_1 = arith.constant 0 : i32
    return %c0_i32, %c0_i32_0 : i32, i32
  }
  func.func @transform_7(%arg0: i32) -> (i32, i32, i32) {
    %c0_i32 = arith.constant 0 : i32
    %c0_i32_0 = arith.constant 0 : i32
    %c0_i32_1 = arith.constant 0 : i32
    return %arg0, %c0_i32, %c0_i32_0 : i32, i32, i32
  }
}

module attributes {stable_mosaic.version = 11 : i64} {
  func.func @_linear_kernel(%arg0: i32, %arg1: i32, %arg2: i32, %arg3: memref<8x32xbf16, #tpu.memory_space<vmem>>, %arg4: memref<32x128xbf16, #tpu.memory_space<vmem>>, %arg5: memref<1x128xf32, #tpu.memory_space<vmem>>, %arg6: memref<8x128xbf16, #tpu.memory_space<vmem>>, %arg7: memref<8x128xf32, #tpu.memory_space<vmem>>) attributes {dimension_semantics = [#tpu.dimension_semantics<parallel>, #tpu.dimension_semantics<parallel>, #tpu.dimension_semantics<arbitrary>], iteration_bounds = array<i64: 2, 1, 1>, scalar_prefetch = 0 : i64, scratch_operands = 1 : i64, tpu.core_type = #tpu.core_type<tc>, window_params = [{transform_indices = @transform_0, window_bounds = array<i64: 8, 32>}, {transform_indices = @transform_1, window_bounds = array<i64: 32, 128>}, {transform_indices = @transform_2, window_bounds = array<i64: 1, 128>}, {transform_indices = @transform_3, window_bounds = array<i64: 8, 128>}]} {
    %c0_i32 = arith.constant 0 : i32
    %0 = arith.cmpi eq, %arg2, %c0_i32 : i32
    %1 = arith.extui %0 : i1 to i32
    %c0_i32_0 = arith.constant 0 : i32
    %2 = arith.cmpi ne, %1, %c0_i32_0 : i32
    scf.if %2 {
      %cst_10 = arith.constant 0.000000e+00 : f32
      %12 = vector.broadcast %cst_10 : f32 to vector<8x128xf32>
      %c0_11 = arith.constant 0 : index
      %c0_12 = arith.constant 0 : index
      %13 = vector.load %arg7[%c0_11, %c0_12] : memref<8x128xf32, #tpu.memory_space<vmem>>, vector<8x128xf32>
      tpu.vector_store %arg7[%c0_11, %c0_12], %12 {strides = array<i32>} : memref<8x128xf32, #tpu.memory_space<vmem>>, vector<8x128xf32>,
    } else {
    }
    %c0 = arith.constant 0 : index
    %c0_1 = arith.constant 0 : index
    %3 = vector.load %arg7[%c0, %c0_1] : memref<8x128xf32, #tpu.memory_space<vmem>>, vector<8x128xf32>
    %c0_2 = arith.constant 0 : index
    %c0_3 = arith.constant 0 : index
    %4 = vector.load %arg3[%c0_2, %c0_3] : memref<8x32xbf16, #tpu.memory_space<vmem>>, vector<8x32xbf16>
    %c0_4 = arith.constant 0 : index
    %c0_5 = arith.constant 0 : index
    %5 = vector.load %arg4[%c0_4, %c0_5] : memref<32x128xbf16, #tpu.memory_space<vmem>>, vector<32x128xbf16>
    %cst = arith.constant dense<0.000000e+00> : vector<8x128xf32>
    %6 = tpu.matmul %4, %5, %cst {dimension_numbers = #tpu.dot_dimension_numbers<[1], [0], [0], [1], [0, 0, 1, 1], [], []>} : vector<8x32xbf16>, vector<32x128xbf16>, vector<8x128xf32> -> vector<8x128xf32>
    %7 = arith.addf %3, %6 : vector<8x128xf32>
    %c0_6 = arith.constant 0 : index
    %c0_7 = arith.constant 0 : index
    %8 = vector.load %arg7[%c0_6, %c0_7] : memref<8x128xf32, #tpu.memory_space<vmem>>, vector<8x128xf32>
    tpu.vector_store %arg7[%c0_6, %c0_7], %7 {strides = array<i32>} : memref<8x128xf32, #tpu.memory_space<vmem>>, vector<8x128xf32>,
    %c0_i32_8 = arith.constant 0 : i32
    %9 = arith.cmpi eq, %arg2, %c0_i32_8 : i32
    %10 = arith.extui %9 : i1 to i32
    %c0_i32_9 = arith.constant 0 : i32
    %11 = arith.cmpi ne, %10, %c0_i32_9 : i32
    scf.if %11 {
      %c0_10 = arith.constant 0 : index
      %c0_11 = arith.constant 0 : index
      %12 = vector.load %arg7[%c0_10, %c0_11] : memref<8x128xf32, #tpu.memory_space<vmem>>, vector<8x128xf32>
      %c0_12 = arith.constant 0 : index
      %c0_13 = arith.constant 0 : index
      %13 = vector.load %arg5[%c0_12, %c0_13] : memref<1x128xf32, #tpu.memory_space<vmem>>, vector<1x128xf32>
      %14 = vector.broadcast %13 : vector<1x128xf32> to vector<8x128xf32>
      %15 = arith.addf %12, %14 : vector<8x128xf32>
      %cst_14 = arith.constant 0.000000e+00 : f32
      %16 = vector.broadcast %cst_14 : f32 to vector<8x128xf32>
      %17 = arith.maximumf %15, %16 : vector<8x128xf32>
      %18 = arith.truncf %17 : vector<8x128xf32> to vector<8x128xbf16>
      %c0_15 = arith.constant 0 : index
      %c0_16 = arith.constant 0 : index
      %19 = vector.load %arg6[%c0_15, %c0_16] : memref<8x128xbf16, #tpu.memory_space<vmem>>, vector<8x128xbf16>
      tpu.vector_store %arg6[%c0_15, %c0_16], %18 {strides = array<i32>} : memref<8x128xbf16, #tpu.memory_space<vmem>>, vector<8x128xbf16>,
    } else {
    }
    return
  }
  func.func @transform_0(%arg0: i32, %arg1: i32, %arg2: i32) -> (i32, i32) {
    %c0_i32 = arith.constant 0 : i32
    return %arg0, %arg2 : i32, i32
  }
  func.func @transform_1(%arg0: i32, %arg1: i32, %arg2: i32) -> (i32, i32) {
    %c0_i32 = arith.constant 0 : i32
    return %arg2, %arg1 : i32, i32
  }
  func.func @transform_2(%arg0: i32, %arg1: i32, %arg2: i32) -> (i32, i32) {
    %c0_i32 = arith.constant 0 : i32
    %c0_i32_0 = arith.constant 0 : i32
    return %c0_i32, %arg1 : i32, i32
  }
  func.func @transform_3(%arg0: i32, %arg1: i32, %arg2: i32) -> (i32, i32) {
    %c0_i32 = arith.constant 0 : i32
    return %arg0, %arg1 : i32, i32
  }
}

module attributes {stable_mosaic.version = 11 : i64} {
  func.func @_linear_add_ln_kernel(%arg0: i32, %arg1: i32, %arg2: memref<8x128xbf16, #tpu.memory_space<vmem>>, %arg3: memref<128x32xbf16, #tpu.memory_space<vmem>>, %arg4: memref<1x32xf32, #tpu.memory_space<vmem>>, %arg5: memref<8x32xbf16, #tpu.memory_space<vmem>>, %arg6: memref<1x32xf32, #tpu.memory_space<vmem>>, %arg7: memref<1x32xf32, #tpu.memory_space<vmem>>, %arg8: memref<8x32xbf16, #tpu.memory_space<vmem>>, %arg9: memref<8x32xf32, #tpu.memory_space<vmem>>) attributes {dimension_semantics = [#tpu.dimension_semantics<parallel>, #tpu.dimension_semantics<arbitrary>], iteration_bounds = array<i64: 2, 1>, scalar_prefetch = 0 : i64, scratch_operands = 1 : i64, tpu.core_type = #tpu.core_type<tc>, window_params = [{transform_indices = @transform_0, window_bounds = array<i64: 8, 128>}, {transform_indices = @transform_1, window_bounds = array<i64: 128, 32>}, {pipeline_mode = #tpu.pipeline_mode<synchronous>, transform_indices = @transform_2, window_bounds = array<i64: 1, 32>}, {transform_indices = @transform_3, window_bounds = array<i64: 8, 32>}, {pipeline_mode = #tpu.pipeline_mode<synchronous>, transform_indices = @transform_4, window_bounds = array<i64: 1, 32>}, {pipeline_mode = #tpu.pipeline_mode<synchronous>, transform_indices = @transform_5, window_bounds = array<i64: 1, 32>}, {transform_indices = @transform_6, window_bounds = array<i64: 8, 32>}]} {
    %c0_i32 = arith.constant 0 : i32
    %0 = arith.cmpi eq, %arg1, %c0_i32 : i32
    %1 = arith.extui %0 : i1 to i32
    %c0_i32_0 = arith.constant 0 : i32
    %2 = arith.cmpi ne, %1, %c0_i32_0 : i32
    scf.if %2 {
      %cst_10 = arith.constant 0.000000e+00 : f32
      %12 = vector.broadcast %cst_10 : f32 to vector<8x32xf32>
      %c0_11 = arith.constant 0 : index
      %c0_12 = arith.constant 0 : index
      %13 = vector.load %arg9[%c0_11, %c0_12] : memref<8x32xf32, #tpu.memory_space<vmem>>, vector<8x32xf32>
      tpu.vector_store %arg9[%c0_11, %c0_12], %12 {strides = array<i32>} : memref<8x32xf32, #tpu.memory_space<vmem>>, vector<8x32xf32>,
    } else {
    }
    %c0 = arith.constant 0 : index
    %c0_1 = arith.constant 0 : index
    %3 = vector.load %arg9[%c0, %c0_1] : memref<8x32xf32, #tpu.memory_space<vmem>>, vector<8x32xf32>
    %c0_2 = arith.constant 0 : index
    %c0_3 = arith.constant 0 : index
    %4 = vector.load %arg2[%c0_2, %c0_3] : memref<8x128xbf16, #tpu.memory_space<vmem>>, vector<8x128xbf16>
    %c0_4 = arith.constant 0 : index
    %c0_5 = arith.constant 0 : index
    %5 = vector.load %arg3[%c0_4, %c0_5] : memref<128x32xbf16, #tpu.memory_space<vmem>>, vector<128x32xbf16>
    %cst = arith.constant dense<0.000000e+00> : vector<8x32xf32>
    %6 = tpu.matmul %4, %5, %cst {dimension_numbers = #tpu.dot_dimension_numbers<[1], [0], [0], [1], [0, 0, 1, 1], [], []>} : vector<8x128xbf16>, vector<128x32xbf16>, vector<8x32xf32> -> vector<8x32xf32>
    %7 = arith.addf %3, %6 : vector<8x32xf32>
    %c0_6 = arith.constant 0 : index
    %c0_7 = arith.constant 0 : index
    %8 = vector.load %arg9[%c0_6, %c0_7] : memref<8x32xf32, #tpu.memory_space<vmem>>, vector<8x32xf32>
    tpu.vector_store %arg9[%c0_6, %c0_7], %7 {strides = array<i32>} : memref<8x32xf32, #tpu.memory_space<vmem>>, vector<8x32xf32>,
    %c0_i32_8 = arith.constant 0 : i32
    %9 = arith.cmpi eq, %arg1, %c0_i32_8 : i32
    %10 = arith.extui %9 : i1 to i32
    %c0_i32_9 = arith.constant 0 : i32
    %11 = arith.cmpi ne, %10, %c0_i32_9 : i32
    scf.if %11 {
      %c0_10 = arith.constant 0 : index
      %c0_11 = arith.constant 0 : index
      %12 = vector.load %arg9[%c0_10, %c0_11] : memref<8x32xf32, #tpu.memory_space<vmem>>, vector<8x32xf32>
      %c0_12 = arith.constant 0 : index
      %c0_13 = arith.constant 0 : index
      %13 = vector.load %arg4[%c0_12, %c0_13] : memref<1x32xf32, #tpu.memory_space<vmem>>, vector<1x32xf32>
      %14 = vector.broadcast %13 : vector<1x32xf32> to vector<8x32xf32>
      %15 = arith.addf %12, %14 : vector<8x32xf32>
      %c0_14 = arith.constant 0 : index
      %c0_15 = arith.constant 0 : index
      %16 = vector.load %arg5[%c0_14, %c0_15] : memref<8x32xbf16, #tpu.memory_space<vmem>>, vector<8x32xbf16>
      %17 = arith.extf %16 : vector<8x32xbf16> to vector<8x32xf32>
      %18 = arith.addf %15, %17 : vector<8x32xf32>
      %cst_16 = arith.constant dense<0.000000e+00> : vector<8xf32>
      %19 = vector.multi_reduction <add>, %18, %cst_16 [1] : vector<8x32xf32> to vector<8xf32>
      %20 = vector.shape_cast %19 : vector<8xf32> to vector<8x1xf32>
      %cst_17 = arith.constant 3.200000e+01 : f32
      %21 = vector.broadcast %cst_17 : f32 to vector<8x1xf32>
      %22 = arith.divf %20, %21 : vector<8x1xf32>
      %23 = vector.broadcast %22 : vector<8x1xf32> to vector<8x32xf32>
      %24 = arith.subf %18, %23 : vector<8x32xf32>
      %25 = arith.mulf %24, %24 : vector<8x32xf32>
      %cst_18 = arith.constant dense<0.000000e+00> : vector<8xf32>
      %26 = vector.multi_reduction <add>, %25, %cst_18 [1] : vector<8x32xf32> to vector<8xf32>
      %27 = vector.shape_cast %26 : vector<8xf32> to vector<8x1xf32>
      %cst_19 = arith.constant 3.200000e+01 : f32
      %28 = vector.broadcast %cst_19 : f32 to vector<8x1xf32>
      %29 = arith.divf %27, %28 : vector<8x1xf32>
      %cst_20 = arith.constant 9.99999974E-6 : f32
      %30 = vector.broadcast %cst_20 : f32 to vector<8x1xf32>
      %31 = arith.addf %29, %30 : vector<8x1xf32>
      %32 = math.rsqrt %31 : vector<8x1xf32>
      %33 = vector.broadcast %32 : vector<8x1xf32> to vector<8x32xf32>
      %34 = arith.mulf %24, %33 : vector<8x32xf32>
      %c0_21 = arith.constant 0 : index
      %c0_22 = arith.constant 0 : index
      %35 = vector.load %arg6[%c0_21, %c0_22] : memref<1x32xf32, #tpu.memory_space<vmem>>, vector<1x32xf32>
      %36 = vector.broadcast %35 : vector<1x32xf32> to vector<8x32xf32>
      %37 = arith.mulf %34, %36 : vector<8x32xf32>
      %c0_23 = arith.constant 0 : index
      %c0_24 = arith.constant 0 : index
      %38 = vector.load %arg7[%c0_23, %c0_24] : memref<1x32xf32, #tpu.memory_space<vmem>>, vector<1x32xf32>
      %39 = vector.broadcast %38 : vector<1x32xf32> to vector<8x32xf32>
      %40 = arith.addf %37, %39 : vector<8x32xf32>
      %41 = arith.truncf %40 : vector<8x32xf32> to vector<8x32xbf16>
      %c0_25 = arith.constant 0 : index
      %c0_26 = arith.constant 0 : index
      %42 = vector.load %arg8[%c0_25, %c0_26] : memref<8x32xbf16, #tpu.memory_space<vmem>>, vector<8x32xbf16>
      tpu.vector_store %arg8[%c0_25, %c0_26], %41 {strides = array<i32>} : memref<8x32xbf16, #tpu.memory_space<vmem>>, vector<8x32xbf16>,
    } else {
    }
    return
  }
  func.func @transform_0(%arg0: i32, %arg1: i32) -> (i32, i32) {
    %c0_i32 = arith.constant 0 : i32
    return %arg0, %arg1 : i32, i32
  }
  func.func @transform_1(%arg0: i32, %arg1: i32) -> (i32, i32) {
    %c0_i32 = arith.constant 0 : i32
    %c0_i32_0 = arith.constant 0 : i32
    return %arg1, %c0_i32 : i32, i32
  }
  func.func @transform_2(%arg0: i32, %arg1: i32) -> (i32, i32) {
    %c0_i32 = arith.constant 0 : i32
    %c0_i32_0 = arith.constant 0 : i32
    %c0_i32_1 = arith.constant 0 : i32
    return %c0_i32, %c0_i32_0 : i32, i32
  }
  func.func @transform_3(%arg0: i32, %arg1: i32) -> (i32, i32) {
    %c0_i32 = arith.constant 0 : i32
    %c0_i32_0 = arith.constant 0 : i32
    return %arg0, %c0_i32 : i32, i32
  }
  func.func @transform_4(%arg0: i32, %arg1: i32) -> (i32, i32) {
    %c0_i32 = arith.constant 0 : i32
    %c0_i32_0 = arith.constant 0 : i32
    %c0_i32_1 = arith.constant 0 : i32
    return %c0_i32, %c0_i32_0 : i32, i32
  }
  func.func @transform_5(%arg0: i32, %arg1: i32) -> (i32, i32) {
    %c0_i32 = arith.constant 0 : i32
    %c0_i32_0 = arith.constant 0 : i32
    %c0_i32_1 = arith.constant 0 : i32
    return %c0_i32, %c0_i32_0 : i32, i32
  }
  func.func @transform_6(%arg0: i32, %arg1: i32) -> (i32, i32) {
    %c0_i32 = arith.constant 0 : i32
    %c0_i32_0 = arith.constant 0 : i32
    return %arg0, %c0_i32 : i32, i32
  }
}

module attributes {stable_mosaic.version = 11 : i64} {
  func.func @_linear_kernel(%arg0: i32, %arg1: i32, %arg2: i32, %arg3: memref<8x32xbf16, #tpu.memory_space<vmem>>, %arg4: memref<32x128xbf16, #tpu.memory_space<vmem>>, %arg5: memref<1x128xf32, #tpu.memory_space<vmem>>, %arg6: memref<8x128xf32, #tpu.memory_space<vmem>>, %arg7: memref<8x128xf32, #tpu.memory_space<vmem>>) attributes {dimension_semantics = [#tpu.dimension_semantics<parallel>, #tpu.dimension_semantics<parallel>, #tpu.dimension_semantics<arbitrary>], iteration_bounds = array<i64: 2, 1, 1>, scalar_prefetch = 0 : i64, scratch_operands = 1 : i64, tpu.core_type = #tpu.core_type<tc>, window_params = [{transform_indices = @transform_0, window_bounds = array<i64: 8, 32>}, {transform_indices = @transform_1, window_bounds = array<i64: 32, 128>}, {transform_indices = @transform_2, window_bounds = array<i64: 1, 128>}, {transform_indices = @transform_3, window_bounds = array<i64: 8, 128>}]} {
    %c0_i32 = arith.constant 0 : i32
    %0 = arith.cmpi eq, %arg2, %c0_i32 : i32
    %1 = arith.extui %0 : i1 to i32
    %c0_i32_0 = arith.constant 0 : i32
    %2 = arith.cmpi ne, %1, %c0_i32_0 : i32
    scf.if %2 {
      %cst_10 = arith.constant 0.000000e+00 : f32
      %12 = vector.broadcast %cst_10 : f32 to vector<8x128xf32>
      %c0_11 = arith.constant 0 : index
      %c0_12 = arith.constant 0 : index
      %13 = vector.load %arg7[%c0_11, %c0_12] : memref<8x128xf32, #tpu.memory_space<vmem>>, vector<8x128xf32>
      tpu.vector_store %arg7[%c0_11, %c0_12], %12 {strides = array<i32>} : memref<8x128xf32, #tpu.memory_space<vmem>>, vector<8x128xf32>,
    } else {
    }
    %c0 = arith.constant 0 : index
    %c0_1 = arith.constant 0 : index
    %3 = vector.load %arg7[%c0, %c0_1] : memref<8x128xf32, #tpu.memory_space<vmem>>, vector<8x128xf32>
    %c0_2 = arith.constant 0 : index
    %c0_3 = arith.constant 0 : index
    %4 = vector.load %arg3[%c0_2, %c0_3] : memref<8x32xbf16, #tpu.memory_space<vmem>>, vector<8x32xbf16>
    %c0_4 = arith.constant 0 : index
    %c0_5 = arith.constant 0 : index
    %5 = vector.load %arg4[%c0_4, %c0_5] : memref<32x128xbf16, #tpu.memory_space<vmem>>, vector<32x128xbf16>
    %cst = arith.constant dense<0.000000e+00> : vector<8x128xf32>
    %6 = tpu.matmul %4, %5, %cst {dimension_numbers = #tpu.dot_dimension_numbers<[1], [0], [0], [1], [0, 0, 1, 1], [], []>} : vector<8x32xbf16>, vector<32x128xbf16>, vector<8x128xf32> -> vector<8x128xf32>
    %7 = arith.addf %3, %6 : vector<8x128xf32>
    %c0_6 = arith.constant 0 : index
    %c0_7 = arith.constant 0 : index
    %8 = vector.load %arg7[%c0_6, %c0_7] : memref<8x128xf32, #tpu.memory_space<vmem>>, vector<8x128xf32>
    tpu.vector_store %arg7[%c0_6, %c0_7], %7 {strides = array<i32>} : memref<8x128xf32, #tpu.memory_space<vmem>>, vector<8x128xf32>,
    %c0_i32_8 = arith.constant 0 : i32
    %9 = arith.cmpi eq, %arg2, %c0_i32_8 : i32
    %10 = arith.extui %9 : i1 to i32
    %c0_i32_9 = arith.constant 0 : i32
    %11 = arith.cmpi ne, %10, %c0_i32_9 : i32
    scf.if %11 {
      %c0_10 = arith.constant 0 : index
      %c0_11 = arith.constant 0 : index
      %12 = vector.load %arg7[%c0_10, %c0_11] : memref<8x128xf32, #tpu.memory_space<vmem>>, vector<8x128xf32>
      %c0_12 = arith.constant 0 : index
      %c0_13 = arith.constant 0 : index
      %13 = vector.load %arg5[%c0_12, %c0_13] : memref<1x128xf32, #tpu.memory_space<vmem>>, vector<1x128xf32>
      %14 = vector.broadcast %13 : vector<1x128xf32> to vector<8x128xf32>
      %15 = arith.addf %12, %14 : vector<8x128xf32>
      %c0_14 = arith.constant 0 : index
      %c0_15 = arith.constant 0 : index
      %16 = vector.load %arg6[%c0_14, %c0_15] : memref<8x128xf32, #tpu.memory_space<vmem>>, vector<8x128xf32>
      tpu.vector_store %arg6[%c0_14, %c0_15], %15 {strides = array<i32>} : memref<8x128xf32, #tpu.memory_space<vmem>>, vector<8x128xf32>,
    } else {
    }
    return
  }
  func.func @transform_0(%arg0: i32, %arg1: i32, %arg2: i32) -> (i32, i32) {
    %c0_i32 = arith.constant 0 : i32
    return %arg0, %arg2 : i32, i32
  }
  func.func @transform_1(%arg0: i32, %arg1: i32, %arg2: i32) -> (i32, i32) {
    %c0_i32 = arith.constant 0 : i32
    return %arg2, %arg1 : i32, i32
  }
  func.func @transform_2(%arg0: i32, %arg1: i32, %arg2: i32) -> (i32, i32) {
    %c0_i32 = arith.constant 0 : i32
    %c0_i32_0 = arith.constant 0 : i32
    return %c0_i32, %arg1 : i32, i32
  }
  func.func @transform_3(%arg0: i32, %arg1: i32, %arg2: i32) -> (i32, i32) {
    %c0_i32 = arith.constant 0 : i32
    return %arg0, %arg1 : i32, i32
  }
}

</mosaic_0001>

<bundles_post_ra>
// kernel: transformer_forward.12
= control target key start
LH: loop header
LB: loop body
LE: loop exit
PB: predicated region body
PF: predicated region fallthrough
CT: control target
= control target key end

     0   :  { %s713_s21 = smov 0   ;;  %s715_s22 = smov 0   ;;  %s795_s0 = inlined_call_operand.vmem [shape: bf16[16,128], index: 0, kind: input, shape index: {}]   ;;  %s796_s1 = inlined_call_operand.vmem [shape: bf16[128,32], index: 1, kind: input, shape index: {}]   ;;  %s797_s2 = inlined_call_operand.vmem [shape: f32[1,32], index: 2, kind: input, shape index: {}]   ;;  %s798_s3 = inlined_call_operand.vmem [shape: bf16[16,32], index: 3, kind: input, shape index: {}]   ;;  %s799_s4 = inlined_call_operand.vmem [shape: f32[1,32], index: 4, kind: input, shape index: {}]   ;;  %s800_s5 = inlined_call_operand.vmem [shape: f32[1,32], index: 5, kind: input, shape index: {}]   ;;  %s801_s6 = inlined_call_operand.vmem [shape: bf16[16,32], index: 6, kind: output, shape index: {}]  }
   0x1   :  { %s717_s23 = smov 0  }
   0x2 LB: > { %s28_s24 = sadd.s32 1, %s670_s22  ;;  %p570_p0 = scmp.ge.s32.totalorder %s674_s23, 1  ;;  %s674_s23 = sphi %s717_s23, %s16_s23   ;;  %s670_s22 = sphi %s715_s22, %s803_s22   ;;  %s666_s21 = sphi %s713_s21, %s802_s21  }
   0x3   : > { %p30_p1 = scmp.ge.s32.totalorder %s28_s24, 2  ;;  %p248_p2 = scmp.lt.s32.totalorder %s674_s23, 3 }
   0x5   : > { %s805_s24 = smov (%p30_p1, %s28_s24), 0  ;;  %p249_p3 = pnand %p570_p0, %p248_p2 }
   0x6   : > { %v642_v0 = vld [vmem:[%s796_s1] sm:$0xff] (!%p249_p3)   ;;  %v676_v1 = vmov (!%p249_p3), 0.0   ;;  %v643_v2 = vld [vmem:[%s796_s1 + $0x8] sm:$0xff] (!%p249_p3)   ;;  %vm677_vm0 = vmmov (!%p249_p3), 0   ;;  %vm314_vm1 = vcmask (!%p249_p3), 261120   ;;  %v644_v3 = vld [vmem:[%s796_s1 + $0x10] sm:$0xff] (!%p249_p3)  }
   0x7   : > { %252 = sbr.rel (%p249_p3) target bundleno = 581 (0x245), region = 44  ;;  %596 = vmatprep.subr.bf16.mxu0 (!%p249_p3), %v676_v1  ;;  %612 = vmatprep.mubr.msk.bf16.mxu0 (!%p249_p3), %vm677_vm0, %v676_v1  ;;  %315 = vst.msk [vmem:[#allocation2] sm:$0xff] (!%p249_p3), %vm314_vm1, %v676_v1  ;;  %v645_v4 = vld [vmem:[%s796_s1 + $0x18] sm:$0xff] (!%p249_p3)   ;;  %v646_v5 = vld [vmem:[%s796_s1 + $0x20] sm:$0xff] (!%p249_p3)   ;;  %p288_p4 = scmp.lt.s32.totalorder (!%p249_p3), %s666_s21, 1  ;;  %v647_v6 = vld [vmem:[%s796_s1 + $0x28] sm:$0xff] (!%p249_p3)  }
   0x8   : > { %597 = vmatpush3.bf16.msra.mxu0 (!%p249_p3), %v642_v0  ;;  %v648_v7 = vld [vmem:[%s796_s1 + $0x30] sm:$0xff] (!%p249_p3)   ;;  %v649_v8 = vld [vmem:[%s796_s1 + $0x38] sm:$0xff] (!%p249_p3)   ;;  %v582_v17 = vld [vmem:[%s797_s2] ss:$0 sm:$0xff] (!%p249_p3)  ;;  %vm471_vm2 = vcmask (!%p249_p3), 257024  }
   0x9   : > { %598 = vmatprep.subr.bf16.mxu0 (!%p249_p3), %v676_v1  ;;  %v583_v32 = vld [vmem:[%s799_s4] ss:$0 sm:$0xff] (!%p249_p3) }
   0xa   : > { %v584_v34 = vld [vmem:[%s800_s5] ss:$0 sm:$0xff] (!%p249_p3) }
   0xc   : > { %599 = vmatpush3.bf16.msra.mxu0 (!%p249_p3), %v643_v2 }
   0xd   : > { %600 = vmatprep.subr.bf16.mxu0 (!%p249_p3), %v676_v1 }
   0xe   : > { %s807_s21 = smov (!%p288_p4, %s666_s21), 1  ;;  %v316_v10 = vld [vmem:[#allocation2] sm:$0xff] }
   0xf   : > { %s757_s15 = sshll.u32 %s807_s21, 2 }
  0x10   : > { %601 = vmatpush3.bf16.msra.mxu0 %v644_v3  ;;  %s294_s20 = scalar_lea.vmem %s795_s0, %s757_s15  ;;  %s304_s26 = scalar_lea.vmem %s798_s3, %s757_s15 }
  0x11   : > { %602 = vmatprep.subr.bf16.mxu0 %v676_v1  ;;  %v317_v9 = vld [vmem:[%s294_s20] sm:$0xf]  ;;  %s308_s11 = scalar_lea.vmem %s801_s6, %s757_s15 }
  0x12   : > { %v437_v16 = vld [vmem:[%s304_s26] sm:$0xf] }
  0x13   : > { %v438_v18 = vunpack.c.l.bf16 %v437_v16 }
  0x14   : > { %603 = vmatpush3.bf16.msra.mxu0 %v645_v4 }
  0x15   : > { %604 = vmatprep.subr.bf16.mxu0 %v676_v1 }
  0x18   : > { %605 = vmatpush3.bf16.msra.mxu0 %v646_v5 }
  0x19   : > { %606 = vmatprep.subr.bf16.mxu0 %v676_v1 }
  0x1c   : > { %607 = vmatpush3.bf16.msra.mxu0 %v647_v6 }
  0x1d   : > { %608 = vmatprep.subr.bf16.mxu0 %v676_v1 }
  0x20   : > { %609 = vmatpush3.bf16.msra.mxu0 %v648_v7 }
  0x21   : > { %610 = vmatprep.subr.bf16.mxu0 %v676_v1 }
  0x24   : > { %611 = vmatpush3.bf16.msra.mxu0 %v649_v8 }
  0x27   : > { %613 = vmatmul.mubr.bf16.vlgmr.msra.gmra.mrb[0].mxu0 %v317_v9 }
  0xfa   : > { %v416_v11 = vpop.f32.mrb[0].mxu0 }
  0xfb   : > { %v422_v12 = vadd.f32 %v416_v11, %v316_v10  ;;  %v614_v13 = vpop.f32.mrb[1].mxu0 }
  0xfc   : > { %v419_v14 = vpop.f32.mrb[2].mxu0 }
  0xfd   : > { %424 = vst.msk [vmem:[#allocation2] sm:$0xff] %vm314_vm1, %v422_v12  ;;  %v615_v15 = vpop.f32.mrb[3].mxu0 }
 0x104   : > { %v428_v19 = vld [vmem:[#allocation2] sm:$0xff] }
 0x105   : > { %v436_v20 = vadd.f32 %v582_v17, %v428_v19 }
 0x107   : > { %v439_v21 = vadd.f32 %v438_v18, %v436_v20 }
 0x109   : > { %v440_v22 = vsel %vm314_vm1, %v439_v21, 0.0 }
 0x10a   : > { %441 = vadd.xlane.f32.xlu0 %v440_v22 }
 0x197   : > { %v442_v23 = vpop.xlane.xlu0 %441 }
 0x198   : > { %v444_v24 = vmul.f32 0.03125, %v442_v23 }
 0x19a   : > { %v445_v25 = vsub.f32 %v439_v21, %v444_v24 }
 0x19c   : > { %v446_v26 = vmul.f32 %v445_v25, %v445_v25 }
 0x19e   : > { %v447_v27 = vsel %vm314_vm1, %v446_v26, 0.0 }
 0x19f   : > { %448 = vadd.xlane.f32.xlu0 %v447_v27 }
 0x22c   : > { %v449_v28 = vpop.xlane.xlu0 %448 }
 0x22d   : > { %v450_v29 = vmul.f32 0.03125, %v449_v28 }
 0x22f   : > { %v451_v30 = vadd.f32 1e-05, %v450_v29 }
 0x231   : > { %650 = vrsqrt.f32 %v451_v30 }
 0x23b   : > { %v651_v31 = vpop.eup %650 }
 0x23c   : > { %v453_v33 = vmul.f32 %v651_v31, %v445_v25 }
 0x23e   : > { %v461_v35 = vmul.f32 %v583_v32, %v453_v33 }
 0x240   : > { %v469_v36 = vadd.f32 %v584_v34, %v461_v35 }
 0x242   : > { %v470_v37 = vpack.c.bf16 %v469_v36, %v469_v36 }
 0x244   : > { %472 = vst.msk [vmem:[%s308_s11] sm:$0xf] %vm471_vm2, %v470_v37 }
 0x245 PF: > { %s16_s23 = sadd.s32 1, %s674_s23   ;;  %s802_s21 = smov %s670_s22 }
 0x246   : > { %p13_p5 = scmp.ge.s32.totalorder %s16_s23, 4   ;;  %s803_s22 = smov %s805_s24 }
 0x248   :  { %15 = sbr.rel (!%p13_p5) target bundleno = 2 (0x2), region = 88 }

// kernel: transformer_forward.11
= control target key start
LH: loop header
LB: loop body
LE: loop exit
PB: predicated region body
PF: predicated region fallthrough
CT: control target
= control target key end

     0   :  { %s544_s12 = smov 0   ;;  %s546_s13 = smov 0   ;;  %s586_s0 = inlined_call_operand.vmem [shape: bf16[16,32], index: 0, kind: input, shape index: {}]   ;;  %s587_s1 = inlined_call_operand.vmem [shape: bf16[32,128], index: 1, kind: input, shape index: {}]   ;;  %s588_s2 = inlined_call_operand.vmem [shape: f32[1,128], index: 2, kind: input, shape index: {}]   ;;  %s589_s3 = inlined_call_operand.vmem [shape: bf16[16,128], index: 3, kind: output, shape index: {}]  }
   0x1   :  { %s548_s14 = smov 0  }
   0x2 LB: > { %s32_s15 = sadd.s32 1, %s516_s13  ;;  %p450_p0 = scmp.ge.s32.totalorder %s520_s14, 1  ;;  %s520_s14 = sphi %s548_s14, %s13_s14   ;;  %s516_s13 = sphi %s546_s13, %s591_s13   ;;  %s512_s12 = sphi %s544_s12, %s590_s12  }
   0x3   : > { %p34_p1 = scmp.ge.s32.totalorder %s32_s15, 2  ;;  %p186_p2 = scmp.lt.s32.totalorder %s520_s14, 3 }
   0x5   : > { %s593_s15 = smov (%p34_p1, %s32_s15), 0  ;;  %p187_p3 = pnand %p450_p0, %p186_p2 }
   0x6   : > { %v496_v0 = vld [vmem:[%s587_s1] sm:$0xff] (!%p187_p3)   ;;  %v522_v1 = vmov (!%p187_p3), 0.0   ;;  %v497_v2 = vld [vmem:[%s587_s1 + $0x8] sm:$0xff] (!%p187_p3)   ;;  %vm523_vm0 = vmmov (!%p187_p3), 0   ;;  %p225_p4 = scmp.lt.s32.totalorder (!%p187_p3), %s512_s12, 1  ;;  %vm275_vm1 = vcmask (!%p187_p3), 261120  }
   0x7   : > { %190 = sbr.rel (%p187_p3) target bundleno = 237 (0xed), region = 32  ;;  %462 = vmatprep.subr.bf16.mxu0 (!%p187_p3), %v522_v1  ;;  %466 = vmatprep.mubr.msk.bf16.mxu0 (!%p187_p3), %vm523_vm0, %v522_v1  ;;  %v456_v4 = vld [vmem:[%s588_s2] ss:$0 sm:$0xff] (!%p187_p3) }
   0x8   : > { %463 = vmatpush3.bf16.msra.mxu0 (!%p187_p3), %v496_v0 }
   0x9   : > { %464 = vmatprep.subr.bf16.mxu0 (!%p187_p3), %v522_v1 }
   0xc   : > { %465 = vmatpush3.bf16.msra.mxu0 (!%p187_p3), %v497_v2 }
   0xe   : > { %s595_s12 = smov (!%p225_p4, %s512_s12), 1 }
   0xf   : > { %s451_s20 = sshll.u32 %s595_s12, 2 }
  0x10   : > { %s231_s23 = scalar_lea.vmem %s586_s0, %s451_s20  ;;  %s250_s28 = scalar_lea.vmem %s589_s3, %s451_s20 }
  0x11   : > { %v258_v3 = vld [vmem:[%s231_s23] sm:$0xf] }
  0x12   : > { %467 = vmatmul.mubr.msk.bf16.vlgmr.msra.gmra.mrb[0].mxu0 %vm275_vm1, %v258_v3 }
  0xe5   : > { %v313_v5 = vpop.f32.mrb[0].mxu0 }
  0xe6   : > { %v332_v6 = vadd.f32 %v456_v4, %v313_v5  ;;  %v468_v7 = vpop.f32.mrb[1].mxu0 }
  0xe7   : > { %v316_v8 = vpop.f32.mrb[2].mxu0 }
  0xe8   : > { %v333_v9 = vmax.f32 %v332_v6, 0.0  ;;  %v469_v10 = vpop.f32.mrb[3].mxu0 }
  0xea   : > { %v334_v11 = vpack.c.bf16 %v333_v9, %v333_v9 }
  0xec   : > { %335 = vst [vmem:[%s250_s28] sm:$0xf] %v334_v11 }
  0xed PF: > { %s13_s14 = sadd.s32 1, %s520_s14   ;;  %s590_s12 = smov %s516_s13 }
  0xee   : > { %p10_p5 = scmp.ge.s32.totalorder %s13_s14, 4   ;;  %s591_s13 = smov %s593_s15 }
  0xf0   :  { %12 = sbr.rel (!%p10_p5) target bundleno = 2 (0x2), region = 76 }

// kernel: transformer_forward.17
= control target key start
LH: loop header
LB: loop body
LE: loop exit
PB: predicated region body
PF: predicated region fallthrough
CT: control target
= control target key end

     0   :  { %8 = vsyncpa [#allocation4], 0  ;;  %s758_s0 = inlined_call_operand.vmem [shape: bf16[16,32], index: 0, kind: input, shape index: {}]   ;;  %s759_s1 = inlined_call_operand.vmem [shape: bf16[32,128], index: 1, kind: input, shape index: {}]   ;;  %s760_s2 = inlined_call_operand.vmem [shape: f32[1,128], index: 2, kind: input, shape index: {}]   ;;  %s761_s3 = inlined_call_operand.hbm [shape: f32[16,128], index: 3, kind: output, shape index: {}]  }
   0x1   :  { %10 = vsyncpa [#allocation4 + $0x1], 0  ;;  %s637_s12 = smov 0   ;;  %s639_s13 = smov 0  }
   0x2   :  { %s641_s14 = smov 0   ;;  %s643_s15 = smov 0  }
   0x3   :  { %s645_s16 = smov 0   ;;  %s647_s17 = smov 0  }
   0x4 LB: > { %s447_s18 = sadd.s32 4294967295, %s612_s17   ;;  %s448_s19 = sadd.s32 4294967294, %s612_s17   ;;  %s612_s17 = sphi %s647_s17, %s16_s17   ;;  %s608_s16 = sphi %s645_s16, %s768_s16   ;;  %s604_s15 = sphi %s643_s15, %s767_s15   ;;  %s600_s14 = sphi %s641_s14, %s766_s14   ;;  %s596_s13 = sphi %s639_s13, %s765_s13   ;;  %s592_s12 = sphi %s637_s12, %s764_s12  }
   0x5   : > { %s35_s20 = sadd.s32 1, %s608_s16  ;;  %s126_s21 = sadd.s32 1, %s600_s14 }
   0x6   : > { %p37_p0 = scmp.ge.s32.totalorder %s35_s20, 2  ;;  %p136_p1 = scmp.ne.s32.totalorder %s600_s14, %s596_s13 }
   0x7   : > { %p137_p2 = scmp.eq.s32.totalorder %s447_s18, 1  ;;  %p142_p3 = scmp.ne.s32.totalorder %s596_s13, %s592_s12 }
   0x8   : > { %s770_s20 = smov (%p37_p0, %s35_s20), 0  ;;  %p143_p5 = scmp.eq.s32.totalorder %s448_s19, 1 }
   0x9   : > { %p677_p4 = por %p137_p2, %p136_p1  ;;  %s121_s23 = ssub.s32 %s608_s16, %s770_s20 }
   0xa   : > { %p453_p6 = scmp.ge.s32.totalorder %s612_s17, 1  ;;  %p124_p7 = scmp.eq.s32.totalorder %s121_s23, 0 }
   0xb   : > { %p684_p8 = por %p143_p5, %p142_p3  ;;  %p189_p9 = scmp.lt.s32.totalorder %s612_s17, 3 }
   0xc   : > { %s690_s25 = scalar_select %p124_p7, %s600_s14, %s126_s21  }
   0xd   : > { %p190_p10 = pnand %p453_p6, %p189_p9 }
   0xe   : > { %v532_v0 = vld [vmem:[%s759_s1] sm:$0xff] (!%p190_p10)   ;;  %v614_v1 = vmov (!%p190_p10), 0.0   ;;  %v533_v2 = vld [vmem:[%s759_s1 + $0x8] sm:$0xff] (!%p190_p10)   ;;  %vm615_vm0 = vmmov (!%p190_p10), 0   ;;  %p226_p11 = scmp.lt.s32.totalorder (!%p190_p10), %s604_s15, 1  ;;  %vm269_vm1 = vcmask (!%p190_p10), 261120  }
   0xf   : > { %193 = sbr.rel (%p190_p10) target bundleno = 255 (0xff), region = 32  ;;  %467 = vmatprep.subr.bf16.mxu0 (!%p190_p10), %v614_v1  ;;  %471 = vmatprep.mubr.msk.bf16.mxu0 (!%p190_p10), %vm615_vm0, %v614_v1  ;;  %s223_s8 = sand.u32 (!%p190_p10), 1, %s596_s13   ;;  %v459_v4 = vld [vmem:[%s760_s2] ss:$0 sm:$0xff] (!%p190_p10) }
  0x10   : > { %468 = vmatpush3.bf16.msra.mxu0 (!%p190_p10), %v532_v0  ;;  %s454_s9 = sshll.u32 (!%p190_p10), %s223_s8, 3  ;;  %s461_s18 = sshll.u32 (!%p190_p10), %s604_s15, 7 }
  0x11   : > { %469 = vmatprep.subr.bf16.mxu0 (!%p190_p10), %v614_v1  ;;  %s225_s19 = scalar_lea.vmem (!%p190_p10), [#allocation3], %s454_s9  ;;  %s711_s27 = scalar_lea.hbm (!%p190_p10), %s761_s3, %s461_s18 }
  0x12   : > { %s343_s21 = sshll.u32 (!%p190_p10), %s225_s19, 4  ;;  %s329_s28 = scalar_lea.sflag (!%p190_p10), [#allocation4], %s223_s8  ;;  %s713_s21 = int_to_ptr.vmem [resolvable:$true] %s343_s21 }
  0x13   : > { %s616_s29 = smov (!%p190_p10), [#allocation3]  }
  0x14   : > { %470 = vmatpush3.bf16.msra.mxu0 (!%p190_p10), %v533_v2 }
  0x16   : > { %s227_s30 = scalar_select %p226_p11, %s604_s15, 1 }
  0x17   : > { %s534_s15 = scalar_lea.vmem %s713_s21, 128 }
  0x18   : > { %s455_s4 = sshll.u32 %s227_s30, 2  ;;  %p535_p12 = scmp.ne.s32.totalorder %s713_s21, %s534_s15 }
  0x19   : > { %s232_s7 = scalar_lea.vmem %s758_s0, %s455_s4  ;;  %s538_s30 = sshll.u32 %s616_s29, 4  ;;  %s539_s30 = int_to_ptr.vmem [resolvable:$false] %s538_s30 }
  0x1a   : > { %v252_v3 = vld [vmem:[%s232_s7] sm:$0xf]  ;;  %p536_p13 = pnand %p535_p12, %p677_p4  ;;  %s540_s4 = scalar_lea.vmem %s539_s30, 256 }
  0x1b   : > { %472 = vmatmul.mubr.msk.bf16.vlgmr.msra.gmra.mrb[0].mxu0 %vm269_vm1, %v252_v3  ;;  %p541_p1 = scmp.lt.s32.totalorder %s713_s21, %s539_s30  ;;  %p542_p2 = scmp.lt.s32.totalorder %s540_s4, %s534_s15 }
  0x1c   : > { %p537_p0 = pneg %p536_p13 }
  0x1d   : > { %p543_p3 = por %p542_p2, %p541_p1 }
  0x1f   : > { %p544_p5 = pnand %p543_p3, %p537_p0 }
  0xee   : > { %v307_v5 = vpop.f32.mrb[0].mxu0 }
  0xef   : > { %v326_v6 = vadd.f32 %v459_v4, %v307_v5  ;;  %v473_v7 = vpop.f32.mrb[1].mxu0 }
  0xf0   : > { %v310_v8 = vpop.f32.mrb[2].mxu0 }
  0xf1   : > { %327 = vst [vmem:[%s225_s19] sm:$0xff] %v326_v6  ;;  %v474_v9 = vpop.f32.mrb[3].mxu0 }
  0xf2   : > { %547 = shalt.err (!%p544_p5)
}
  0xf3   : > { %s548_s5 = scalar_lea.hbm %s711_s27, 128  ;;  %s552_s8 = scalar_lea.hbm %s761_s3, 256 }
  0xf4   : > { %p549_p6 = scmp.ne.s32.totalorder %s711_s27, %s548_s5  ;;  %p553_p10 = scmp.lt.u32.totalorder %s711_s27, %s761_s3 }
  0xf5   : > { %p554_p11 = scmp.lt.u32.totalorder %s552_s8, %s548_s5  ;;  %p556_p13 = scmp.lt.u32.totalorder %s548_s5, %s711_s27 }
  0xf6   : > { %p550_p7 = pnand %p549_p6, %p677_p4 }
  0xf7   : > { %p555_p12 = por %p554_p11, %p553_p10 }
  0xf8   : > { %p551_p9 = pneg %p550_p7 }
  0xf9   : > { %p557_p0 = por %p556_p13, %p555_p12 }
  0xfb   : > { %p558_p1 = pnand %p557_p0, %p551_p9 }
  0xfd   : > { %561 = shalt.err (!%p558_p1)
}
  0xfe   : > { %475 = dma.vmem_to_hbm [thread:$0]  (%p677_p4), %s713_s21, 128, %s711_s27, %s329_s28  }
  0xff PF: > { %p481_p2 = scmp.ge.s32.totalorder %s612_s17, 2  ;;  %s355_s11 = sand.u32 1, %s592_s12  }
 0x100   : > { %s356_s18 = scalar_lea.sflag [#allocation4], %s355_s11 }
 0x101   : > { %p478_p3 = pnand %p481_p2, %p684_p8 }
 0x103   : > { %587 = dma.done.wait (!%p478_p3), %s356_s18, 128  }
 0x104   : > { %589 = vsyncadd (!%p478_p3), %s356_s18, 4294967168  ;;  %s16_s17 = sadd.s32 1, %s612_s17   ;;  %s764_s12 = smov %s596_s13 }
 0x105   : > { %p13_p5 = scmp.ge.s32.totalorder %s16_s17, 4   ;;  %s765_s13 = smov %s600_s14 }
 0x106   : > { %s766_s14 = smov %s690_s25  ;;  %s767_s15 = smov %s608_s16 }
 0x107   : > { %s768_s16 = smov %s770_s20  ;;  %15 = sbr.rel (!%p13_p5) target bundleno = 4 (0x4), region = 81 }
 0x10e   :  { %361 = vsyncpa [#allocation4], 1 }
 0x10f   :  { %363 = vsyncpa [#allocation4 + $0x1], 1 }

// kernel: transformer_forward.9
= control target key start
LH: loop header
LB: loop body
LE: loop exit
PB: predicated region body
PF: predicated region fallthrough
CT: control target
= control target key end

     0   :  { %s2128_s24 = smov 0   ;;  %s2392_s0 = inlined_call_operand.vmem [shape: bf16[2,8,32], index: 0, kind: input, shape index: {}]   ;;  %s2393_s1 = inlined_call_operand.vmem [shape: bf16[32,96], index: 1, kind: input, shape index: {}]   ;;  %s2394_s2 = inlined_call_operand.vmem [shape: f32[1,96], index: 2, kind: input, shape index: {}]   ;;  %s2395_s3 = inlined_call_operand.vmem [shape: bf16[8,4,32], index: 3, kind: input, shape index: {}]   ;;  %s2396_s4 = inlined_call_operand.vmem [shape: f32[1,32], index: 4, kind: input, shape index: {}]   ;;  %s2397_s5 = inlined_call_operand.vmem [shape: f32[1,32], index: 5, kind: input, shape index: {}]   ;;  %s2398_s6 = inlined_call_operand.vmem [shape: f32[1,32], index: 6, kind: input, shape index: {}]   ;;  %s2399_s7 = inlined_call_operand.vmem [shape: bf16[2,8,32], index: 7, kind: output, shape index: {}]  }
   0x1 LB: > { %s1736_s25 = sadd.s32 4294967295, %s2061_s24   ;;  %p1740_p0 = scmp.ge.s32.totalorder %s2061_s24, 1  ;;  %s2061_s24 = sphi %s2128_s24, %s17_s24  }
   0x2   : > { %p236_p1 = scmp.lt.s32.totalorder %s2061_s24, 3 }
   0x4   : > { %p237_p2 = pnand %p1740_p0, %p236_p1 }
   0x5   : > { %v2019_v0 = vld [vmem:[%s2393_s1] sm:$0xff] (!%p237_p2)   ;;  %v2063_v1 = vmov (!%p237_p2), 0.0   ;;  %v2020_v2 = vld [vmem:[%s2393_s1 + $0x8] sm:$0xff] (!%p237_p2)   ;;  %vm2064_vm0 = vmmov (!%p237_p2), 0   ;;  %p266_p3 = scmp.lt.s32.totalorder (!%p237_p2), %s1736_s25, 1  ;;  %vm299_vm1 = vcmask (!%p237_p2), 261120   ;;  %v343_v18 = vlaneseq (!%p237_p2) }
   0x6   : > { %240 = sbr.rel (%p237_p2) target bundleno = 5077 (0x13d5), region = 48  ;;  %1834 = vmatprep.subr.bf16.mxu0 (!%p237_p2), %v2063_v1  ;;  %1842 = vmatprep.subr.bf16.mxu1 (!%p237_p2), %v2063_v1  ;;  %v1743_v4 = vld [vmem:[%s2394_s2] ss:$0 sm:$0xff] (!%p237_p2)  ;;  %s2065_s13 = smov (!%p237_p2), 96   ;;  %vm354_vm2 = vcmask (!%p237_p2), 31744   ;;  %vm402_vm4 = vcmask (!%p237_p2), 64512  }
   0x7   : > { %1835 = vmatpush3.bf16.msra.mxu0 (!%p237_p2), %v2019_v0  ;;  %1838 = vmatprep.mubr.msk.bf16.mxu0 (!%p237_p2), %vm2064_vm0, %v2063_v1  ;;  %s2066_s14 = smov (!%p237_p2), 124   ;;  %s2067_s15 = smov (!%p237_p2), 92   ;;  %v344_v19 = vshrl.u32 (!%p237_p2), %v343_v18, 7  ;;  %v346_v20 = vand.u32 (!%p237_p2), 127, %v343_v18  ;;  %vm420_vm5 = vcmask (!%p237_p2), 1043456   ;;  %vm584_vm6 = vcmask (!%p237_p2), 1041408  }
   0x8   : > { %1836 = vmatprep.subr.bf16.mxu0 (!%p237_p2), %v2063_v1  ;;  %1844 = vmatprep.mubr.msk.bf16.mxu1 (!%p237_p2), %vm2064_vm0, %v2063_v1  ;;  %s2068_s16 = smov (!%p237_p2), 64   ;;  %s2069_s17 = smov (!%p237_p2), 60   ;;  %v465_v56 = vld [vmem:[%s2395_s3] sm:$0x3] (!%p237_p2)  ;;  %v1751_v58 = vld [vmem:[%s2395_s3 + $0x2] sm:$0x3] (!%p237_p2) }
   0x9   : > { %vm2185_vm3 = vcmp.le.s32.totalorder (!%p237_p2), %v346_v20, %v344_v19  ;;  %s2070_s18 = smov (!%p237_p2), 120   ;;  %s2071_s19 = smov (!%p237_p2), 88   ;;  %v632_v57 = vsel (!%p237_p2), %vm584_vm6, %v465_v56, 0  ;;  %v586_v59 = vsel (!%p237_p2), %vm584_vm6, %v1751_v58, 0  ;;  %vm1681_vm7 = vcmask (!%p237_p2), 257024  }
   0xa   : > { %s2072_s26 = smov (!%p237_p2), 84   ;;  %s2073_s27 = smov (!%p237_p2), 116  }
   0xb   : > { %1837 = vmatpush3.bf16.msra.mxu0 (!%p237_p2), %v2020_v2  ;;  %s2074_s28 = smov (!%p237_p2), 56   ;;  %s2075_s9 = smov (!%p237_p2), 52  }
   0xc   : > { %1848 = vmatprep.subr.bf16.mxu0 (!%p237_p2), %v2063_v1  ;;  %s2077_s11 = smov (!%p237_p2), 80   ;;  %s2082_s20 = smov (!%p237_p2), 104  }
   0xd   : > { %s2403_s25 = smov (!%p266_p3, %s1736_s25), 1  ;;  %s2083_s21 = smov 72  }
   0xe   : > { %s1741_s30 = sshll.u32 %s2403_s25, 2 }
   0xf   : > { %s269_s10 = scalar_lea.vmem %s2392_s0, %s1741_s30 }
  0x10   : > { %v2158_v3 = vld [vmem:[%s269_s10] sm:$0xf]  ;;  %s2076_s10 = smov 112  }
  0x11   : > { %1839 = vmatmul.mubr.msk.bf16.vlgmr.msra.gmra.mrb[0].mxu0 %vm299_vm1, %v2158_v3 }
  0x12   : > { %1850 = vmatprep.mubr.msk.bf16.mxu0 %vm2064_vm0, %v2063_v1 }
  0xe4   : > { %v337_v5 = vpop.f32.mrb[0].mxu0 }
  0xe5   : > { %v338_v6 = vadd.f32 %v1743_v4, %v337_v5  ;;  %v1840_v7 = vpop.f32.mrb[1].mxu0 }
  0xe6   : > { %v340_v8 = vpop.f32.mrb[2].mxu0 }
  0xe7   : > { %v348_v9 = vmul.f32 0.17677669, %v338_v6  ;;  %v2167_v10 = vpack.c.bf16 %v338_v6, %v338_v6  ;;  %v1841_v11 = vpop.f32.mrb[3].mxu0 }
  0xe9   : > { %v2169_v12 = vpack.c.bf16 %v348_v9, %v348_v9  ;;  %352 = vrot.lane.b32.xlu0 %v2167_v10, %s2065_s13 }
  0xeb   : > { %467 = vrot.lane.b32.xlu1 %v2169_v12, %s2066_s14  ;;  %s2078_s14 = smov 76  }
  0xed   : > { %469 = vrot.lane.b32.xlu0 %v2167_v10, %s2067_s15  ;;  %s2079_s15 = smov 108  }
 0x15b   : > { %v353_v13 = vpop.permute.xlu0 %352 }
 0x15c   : > { %v359_v14 = vsel %vm354_vm2, %v353_v13, 0 }
 0x15d   : > { %1843 = vmatpush3.bf16.xpose.msra.mxu1 %v359_v14  ;;  %v468_v17 = vpop.permute.xlu1 %467 }
 0x15e   : > { %1854 = vmatprep.subr.bf16.mxu1 %v2063_v1 }
 0x15f   : > { %v470_v15 = vpop.permute.xlu0 %469 }
 0x160   : > { %v475_v16 = vsel %vm354_vm2, %v470_v15, 0 }
 0x164   : > { %1845 = vmatmul.mubr.msk.bf16.vlgmr.msra.gmra.mrb[0].mxu1 %vm354_vm2, %v2169_v12 }
 0x165   : > { %1855 = vmatpush3.bf16.xpose.msra.mxu1 %v475_v16  ;;  %1856 = vmatprep.mubr.msk.bf16.mxu1 %vm2064_vm0, %v2063_v1 }
 0x166   : > { %1866 = vmatprep.subr.bf16.mxu1 %v2063_v1 }
 0x16c   : > { %1857 = vmatmul.mubr.msk.bf16.vlgmr.msra.gmra.mrb[4].mxu1 %vm354_vm2, %v468_v17 }
 0x16d   : > { %1868 = vmatprep.mubr.msk.bf16.mxu1 %vm2064_vm0, %v2063_v1  ;;  %1867 = vmatpush3.bf16.msra.mxu1 %v586_v59 }
 0x16e   : > { %1878 = vmatprep.subr.bf16.mxu1 %v2063_v1 }
 0x237   : > { %v395_v22 = vpop.f32.mrb[0].mxu1 }
 0x238   : > { %v401_v23 = vsel %vm2185_vm3, %v395_v22, -1.767767e+19  ;;  %v1846_v24 = vpop.f32.mrb[1].mxu1 }
 0x239   : > { %v398_v25 = vpop.f32.mrb[2].mxu1  ;;  %v403_v26 = vsel %vm402_vm4, %v401_v23, -inf }
 0x23a   : > { %404 = vmax.xlane.f32.xlu1 %v403_v26  ;;  %v1847_v27 = vpop.f32.mrb[3].mxu1 }
 0x23f   : > { %v511_v28 = vpop.f32.mrb[4].mxu1 }
 0x240   : > { %v517_v29 = vsel %vm2185_vm3, %v511_v28, -1.767767e+19  ;;  %v1858_v30 = vpop.f32.mrb[5].mxu1 }
 0x241   : > { %v514_v31 = vpop.f32.mrb[6].mxu1  ;;  %v518_v32 = vsel %vm402_vm4, %v517_v29, -inf }
 0x242   : > { %519 = vmax.xlane.f32.xlu0 %v518_v32  ;;  %v1859_v33 = vpop.f32.mrb[7].mxu1 }
 0x2c7   : > { %v405_v34 = vpop.xlane.xlu1 %404 }
 0x2c8   : > { %v406_v35 = vsub.f32 %v401_v23, %v405_v34 }
 0x2ca   : > { %v407_v36 = vmul.f32 1.442695, %v406_v35 }
 0x2cc   : > { %2021 = vpow2.f32 %v407_v36 }
 0x2cf   : > { %v520_v37 = vpop.xlane.xlu0 %519 }
 0x2d0   : > { %v521_v38 = vsub.f32 %v517_v29, %v520_v37 }
 0x2d2   : > { %v522_v39 = vmul.f32 1.442695, %v521_v38 }
 0x2d4   : > { %2023 = vpow2.f32 %v522_v39 }
 0x2d6   : > { %v2022_v40 = vpop.eup %2021 }
 0x2d7   : > { %v409_v41 = vsel %vm402_vm4, %v2022_v40, 0.0 }
 0x2d8   : > { %410 = vadd.xlane.f32.xlu0 %v409_v41 }
 0x2de   : > { %v2024_v42 = vpop.eup %2023 }
 0x2df   : > { %v524_v43 = vsel %vm402_vm4, %v2024_v42, 0.0 }
 0x2e0   : > { %525 = vadd.xlane.f32.xlu1 %v524_v43  ;;  %v1756_v43 = vld [vmem:[%s2395_s3 + $0x4] sm:$0x3] }
 0x2ee   : > { %415 = vrot.lane.b32.xlu0 %v2167_v10, %s2068_s16  ;;  %s2080_s16 = smov 48  }
 0x2f1   : > { %530 = vrot.lane.b32.xlu1 %v2167_v10, %s2069_s17 }
 0x2f2   : > { %674 = vrot.lane.b32.xlu0 %v2169_v12, %s2070_s18 }
 0x2f5   : > { %676 = vrot.lane.b32.xlu1 %v2167_v10, %s2071_s19  ;;  %s2081_s19 = smov 44  }
 0x365   : > { %v411_v44 = vpop.xlane.xlu0 %410 }
 0x366   : > { %2025 = vrcp.f32 %v411_v44  ;;  %v792_v44 = vsel %vm584_vm6, %v1756_v43, 0 }
 0x369   : > { %v416_v45 = vpop.permute.xlu0 %415 }
 0x36a   : > { %v422_v46 = vsel %vm420_vm5, %v416_v45, 0 }
 0x36b   : > { %1849 = vmatpush3.bf16.msra.mxu0 %v422_v46 }
 0x36c   : > { %1860 = vmatprep.subr.bf16.mxu0 %v2063_v1 }
 0x36d   : > { %v526_v47 = vpop.xlane.xlu1 %525  ;;  %v675_v11 = vpop.permute.xlu0 %674 }
 0x36e   : > { %2027 = vrcp.f32 %v526_v47 }
 0x370   : > { %v2026_v48 = vpop.eup %2025 }
 0x371   : > { %v413_v49 = vmul.f32 %v2026_v48, %v2022_v40  ;;  %v531_v50 = vpop.permute.xlu1 %530 }
 0x372   : > { %v536_v52 = vsel %vm420_vm5, %v531_v50, 0 }
 0x373   : > { %v414_v51 = vpack.c.bf16 %v413_v49, %v413_v49 }
 0x375   : > { %1851 = vmatmul.mubr.msk.bf16.vlgmr.msra.gmra.mrb[4].mxu0 %vm402_vm4, %v414_v51  ;;  %v677_v2 = vpop.permute.xlu1 %676 }
 0x376   : > { %1861 = vmatpush3.bf16.msra.mxu0 %v536_v52  ;;  %1862 = vmatprep.mubr.msk.bf16.mxu0 %vm2064_vm0, %v2063_v1  ;;  %v682_v8 = vsel %vm354_vm2, %v677_v2, 0 }
 0x377   : > { %1872 = vmatprep.subr.bf16.mxu0 %v2063_v1 }
 0x378   : > { %v2028_v53 = vpop.eup %2027 }
 0x379   : > { %v528_v54 = vmul.f32 %v2028_v53, %v2024_v42 }
 0x37b   : > { %v529_v55 = vpack.c.bf16 %v528_v54, %v528_v54 }
 0x37d   : > { %1863 = vmatmul.mubr.msk.bf16.vlgmr.msra.gmra.mrb[8].mxu0 %vm402_vm4, %v529_v55 }
 0x37e   : > { %1874 = vmatprep.mubr.msk.bf16.mxu0 %vm2064_vm0, %v2063_v1  ;;  %1873 = vmatpush3.bf16.msra.mxu0 %v632_v57 }
 0x37f   : > { %1884 = vmatprep.subr.bf16.mxu0 %v2063_v1 }
 0x448   : > { %v458_v60 = vpop.f32.mrb[4].mxu0 }
 0x449   : > { %v464_v61 = vpack.c.bf16 %v458_v60, %v458_v60  ;;  %v1852_v62 = vpop.f32.mrb[5].mxu0 }
 0x44a   : > { %v461_v63 = vpop.f32.mrb[6].mxu0 }
 0x44b   : > { %v1853_v0 = vpop.f32.mrb[7].mxu0  ;;  %1875 = vmatmul.mubr.msk.bf16.vlgmr.msra.gmra.mrb[12].mxu0 %vm354_vm2, %v464_v61 }
 0x44c   : > { %1886 = vmatprep.mubr.msk.bf16.mxu0 %vm2064_vm0, %v2063_v1 }
 0x450   : > { %v572_v4 = vpop.f32.mrb[8].mxu0 }
 0x451   : > { %v578_v5 = vpack.c.bf16 %v572_v4, %v572_v4  ;;  %v1864_v6 = vpop.f32.mrb[9].mxu0 }
 0x452   : > { %v575_v7 = vpop.f32.mrb[10].mxu0 }
 0x453   : > { %v1865_v9 = vpop.f32.mrb[11].mxu0  ;;  %1869 = vmatmul.mubr.msk.bf16.vlgmr.msra.gmra.mrb[8].mxu1 %vm354_vm2, %v578_v5 }
 0x454   : > { %1879 = vmatpush3.bf16.xpose.msra.mxu1 %v682_v8  ;;  %1880 = vmatprep.mubr.msk.bf16.mxu1 %vm2064_vm0, %v2063_v1 }
 0x455   : > { %1890 = vmatprep.subr.bf16.mxu1 %v2063_v1 }
 0x45b   : > { %1881 = vmatmul.mubr.msk.bf16.vlgmr.msra.gmra.mrb[12].mxu1 %vm354_vm2, %v675_v11 }
 0x45c   : > { %1892 = vmatprep.mubr.msk.bf16.mxu1 %vm2064_vm0, %v2063_v1  ;;  %1891 = vmatpush3.bf16.msra.mxu1 %v792_v44 }
 0x45d   : > { %1902 = vmatprep.subr.bf16.mxu1 %v2063_v1 }
 0x51e   : > { %v668_v13 = vpop.f32.mrb[12].mxu0 }
 0x51f   : > { %v1876_v14 = vpop.f32.mrb[13].mxu0 }
 0x520   : > { %v671_v15 = vpop.f32.mrb[14].mxu0 }
 0x521   : > { %v1877_v16 = vpop.f32.mrb[15].mxu0  ;;  %v1760_v15 = vld [vmem:[%s2395_s3 + $0x6] sm:$0x3] }
 0x522   : > { %v953_v16 = vsel %vm584_vm6, %v1760_v15, 0 }
 0x526   : > { %v622_v17 = vpop.f32.mrb[8].mxu1 }
 0x527   : > { %v2232_v18 = vadd.f32 %v668_v13, %v622_v17  ;;  %v1870_v19 = vpop.f32.mrb[9].mxu1 }
 0x528   : > { %v625_v20 = vpop.f32.mrb[10].mxu1 }
 0x529   : > { %v1871_v22 = vpop.f32.mrb[11].mxu1 }
 0x52e   : > { %v718_v23 = vpop.f32.mrb[12].mxu1 }
 0x52f   : > { %v724_v24 = vsel %vm2185_vm3, %v718_v23, -1.767767e+19  ;;  %v1882_v25 = vpop.f32.mrb[13].mxu1 }
 0x530   : > { %v721_v26 = vpop.f32.mrb[14].mxu1  ;;  %v725_v27 = vsel %vm402_vm4, %v724_v24, -inf }
 0x531   : > { %726 = vmax.xlane.f32.xlu1 %v725_v27  ;;  %v1883_v28 = vpop.f32.mrb[15].mxu1 }
 0x542   : > { %837 = vrot.lane.b32.xlu1 %v2167_v10, %s2072_s26  ;;  %s2084_s26 = smov 68  }
 0x546   : > { %835 = vrot.lane.b32.xlu1 %v2169_v12, %s2073_s27  ;;  %s2085_s27 = smov 100  }
 0x5be   : > { %v727_v29 = vpop.xlane.xlu1 %726 }
 0x5bf   : > { %v728_v30 = vsub.f32 %v724_v24, %v727_v29 }
 0x5c1   : > { %v729_v31 = vmul.f32 1.442695, %v728_v30 }
 0x5c2   : > { %v838_v39 = vpop.permute.xlu1 %837 }
 0x5c3   : > { %2029 = vpow2.f32 %v729_v31  ;;  %v843_v41 = vsel %vm354_vm2, %v838_v39, 0 }
 0x5c6   : > { %v836_v42 = vpop.permute.xlu1 %835 }
 0x5cd   : > { %v2030_v32 = vpop.eup %2029 }
 0x5ce   : > { %v731_v33 = vsel %vm402_vm4, %v2030_v32, 0.0 }
 0x5cf   : > { %732 = vadd.xlane.f32.xlu0 %v731_v33 }
 0x5e5   : > { %737 = vrot.lane.b32.xlu0 %v2167_v10, %s2074_s28  ;;  %s2086_s28 = smov 40  }
 0x65c   : > { %v733_v34 = vpop.xlane.xlu0 %732 }
 0x65d   : > { %2031 = vrcp.f32 %v733_v34 }
 0x660   : > { %v738_v35 = vpop.permute.xlu0 %737 }
 0x661   : > { %v743_v36 = vsel %vm420_vm5, %v738_v35, 0 }
 0x662   : > { %1885 = vmatpush3.bf16.msra.mxu0 %v743_v36 }
 0x663   : > { %1896 = vmatprep.subr.bf16.mxu0 %v2063_v1 }
 0x667   : > { %v2032_v37 = vpop.eup %2031 }
 0x668   : > { %v735_v38 = vmul.f32 %v2032_v37, %v2030_v32 }
 0x66a   : > { %v736_v40 = vpack.c.bf16 %v735_v38, %v735_v38 }
 0x66c   : > { %1887 = vmatmul.mubr.msk.bf16.vlgmr.msra.gmra.mrb[16].mxu0 %vm402_vm4, %v736_v40 }
 0x66d   : > { %1897 = vmatpush3.bf16.xpose.msra.mxu0 %v843_v41  ;;  %1898 = vmatprep.mubr.msk.bf16.mxu0 %vm2064_vm0, %v2063_v1 }
 0x66e   : > { %1908 = vmatprep.subr.bf16.mxu0 %v2063_v1 }
 0x674   : > { %1899 = vmatmul.mubr.msk.bf16.vlgmr.msra.gmra.mrb[20].mxu0 %vm354_vm2, %v836_v42 }
 0x675   : > { %1910 = vmatprep.mubr.msk.bf16.mxu0 %vm2064_vm0, %v2063_v1  ;;  %1909 = vmatpush3.bf16.msra.mxu0 %v953_v16 }
 0x676   : > { %1920 = vmatprep.subr.bf16.mxu0 %v2063_v1 }
 0x73f   : > { %v779_v45 = vpop.f32.mrb[16].mxu0 }
 0x740   : > { %v785_v46 = vpack.c.bf16 %v779_v45, %v779_v45  ;;  %v1888_v47 = vpop.f32.mrb[17].mxu0 }
 0x741   : > { %v782_v48 = vpop.f32.mrb[18].mxu0 }
 0x742   : > { %v1889_v49 = vpop.f32.mrb[19].mxu0  ;;  %1893 = vmatmul.mubr.msk.bf16.vlgmr.msra.gmra.mrb[16].mxu1 %vm354_vm2, %v785_v46  ;;  %v1764_v48 = vld [vmem:[%s2395_s3 + $0x8] sm:$0x3] }
 0x743   : > { %1904 = vmatprep.mubr.msk.bf16.mxu1 %vm2064_vm0, %v2063_v1  ;;  %v1114_v49 = vsel %vm584_vm6, %v1764_v48, 0 }
 0x747   : > { %v879_v50 = vpop.f32.mrb[20].mxu0 }
 0x748   : > { %v885_v51 = vsel %vm2185_vm3, %v879_v50, -1.767767e+19  ;;  %v1900_v52 = vpop.f32.mrb[21].mxu0 }
 0x749   : > { %v882_v53 = vpop.f32.mrb[22].mxu0  ;;  %v886_v54 = vsel %vm402_vm4, %v885_v51, -inf }
 0x74a   : > { %887 = vmax.xlane.f32.xlu0 %v886_v54  ;;  %v1901_v55 = vpop.f32.mrb[23].mxu0 }
 0x760   : > { %898 = vrot.lane.b32.xlu0 %v2167_v10, %s2075_s9  ;;  %s2087_s9 = smov 36  }
 0x764   : > { %996 = vrot.lane.b32.xlu0 %v2169_v12, %s2076_s10 }
 0x7d7   : > { %v888_v56 = vpop.xlane.xlu0 %887 }
 0x7d8   : > { %v889_v57 = vsub.f32 %v885_v51, %v888_v56 }
 0x7da   : > { %v890_v58 = vmul.f32 1.442695, %v889_v57 }
 0x7db   : > { %v899_v59 = vpop.permute.xlu0 %898 }
 0x7dc   : > { %2033 = vpow2.f32 %v890_v58  ;;  %v904_v60 = vsel %vm420_vm5, %v899_v59, 0 }
 0x7dd   : > { %1903 = vmatpush3.bf16.msra.mxu1 %v904_v60 }
 0x7de   : > { %1914 = vmatprep.subr.bf16.mxu1 %v2063_v1 }
 0x7df   : > { %v997_v14 = vpop.permute.xlu0 %996 }
 0x7e6   : > { %v2034_v61 = vpop.eup %2033 }
 0x7e7   : > { %v892_v62 = vsel %vm402_vm4, %v2034_v61, 0.0 }
 0x7e8   : > { %893 = vadd.xlane.f32.xlu1 %v892_v62 }
 0x7f9   : > { %998 = vrot.lane.b32.xlu1 %v2167_v10, %s2077_s11 }
 0x815   : > { %v828_v63 = vpop.f32.mrb[16].mxu1 }
 0x816   : > { %v834_v0 = vadd.f32 %v828_v63, %v2232_v18  ;;  %v1894_v2 = vpop.f32.mrb[17].mxu1 }
 0x817   : > { %v831_v4 = vpop.f32.mrb[18].mxu1 }
 0x818   : > { %v1895_v5 = vpop.f32.mrb[19].mxu1 }
 0x875   : > { %v894_v6 = vpop.xlane.xlu1 %893 }
 0x876   : > { %2035 = vrcp.f32 %v894_v6 }
 0x879   : > { %v999_v9 = vpop.permute.xlu1 %998 }
 0x87a   : > { %v1004_v13 = vsel %vm354_vm2, %v999_v9, 0 }
 0x880   : > { %v2036_v7 = vpop.eup %2035 }
 0x881   : > { %v896_v8 = vmul.f32 %v2036_v7, %v2034_v61 }
 0x883   : > { %v897_v11 = vpack.c.bf16 %v896_v8, %v896_v8 }
 0x885   : > { %1905 = vmatmul.mubr.msk.bf16.vlgmr.msra.gmra.mrb[20].mxu1 %vm402_vm4, %v897_v11 }
 0x886   : > { %1915 = vmatpush3.bf16.xpose.msra.mxu1 %v1004_v13  ;;  %1916 = vmatprep.mubr.msk.bf16.mxu1 %vm2064_vm0, %v2063_v1 }
 0x887   : > { %1926 = vmatprep.subr.bf16.mxu1 %v2063_v1 }
 0x88d   : > { %1917 = vmatmul.mubr.msk.bf16.vlgmr.msra.gmra.mrb[24].mxu1 %vm354_vm2, %v997_v14 }
 0x88e   : > { %1928 = vmatprep.mubr.msk.bf16.mxu1 %vm2064_vm0, %v2063_v1  ;;  %1927 = vmatpush3.bf16.msra.mxu1 %v1114_v49 }
 0x88f   : > { %1938 = vmatprep.subr.bf16.mxu1 %v2063_v1 }
 0x958   : > { %v940_v17 = vpop.f32.mrb[20].mxu1 }
 0x959   : > { %v946_v18 = vpack.c.bf16 %v940_v17, %v940_v17  ;;  %v1906_v19 = vpop.f32.mrb[21].mxu1 }
 0x95a   : > { %v943_v20 = vpop.f32.mrb[22].mxu1 }
 0x95b   : > { %v1907_v22 = vpop.f32.mrb[23].mxu1  ;;  %1911 = vmatmul.mubr.msk.bf16.vlgmr.msra.gmra.mrb[24].mxu0 %vm354_vm2, %v946_v18  ;;  %v1768_v20 = vld [vmem:[%s2395_s3 + $0xa] sm:$0x3] }
 0x95c   : > { %1922 = vmatprep.mubr.msk.bf16.mxu0 %vm2064_vm0, %v2063_v1  ;;  %v1275_v22 = vsel %vm584_vm6, %v1768_v20, 0 }
 0x960   : > { %v1040_v23 = vpop.f32.mrb[24].mxu1 }
 0x961   : > { %v1046_v24 = vsel %vm2185_vm3, %v1040_v23, -1.767767e+19  ;;  %v1918_v25 = vpop.f32.mrb[25].mxu1 }
 0x962   : > { %v1043_v26 = vpop.f32.mrb[26].mxu1  ;;  %v1047_v27 = vsel %vm402_vm4, %v1046_v24, -inf }
 0x963   : > { %1048 = vmax.xlane.f32.xlu1 %v1047_v27  ;;  %v1919_v28 = vpop.f32.mrb[27].mxu1 }
 0x974   : > { %1159 = vrot.lane.b32.xlu1 %v2167_v10, %s2078_s14 }
 0x978   : > { %1157 = vrot.lane.b32.xlu1 %v2169_v12, %s2079_s15 }
 0x9f0   : > { %v1049_v29 = vpop.xlane.xlu1 %1048 }
 0x9f1   : > { %v1050_v30 = vsub.f32 %v1046_v24, %v1049_v29 }
 0x9f3   : > { %v1051_v31 = vmul.f32 1.442695, %v1050_v30 }
 0x9f4   : > { %v1160_v44 = vpop.permute.xlu1 %1159 }
 0x9f5   : > { %2037 = vpow2.f32 %v1051_v31  ;;  %v1165_v46 = vsel %vm354_vm2, %v1160_v44, 0 }
 0x9f8   : > { %v1158_v47 = vpop.permute.xlu1 %1157 }
 0x9ff   : > { %v2038_v32 = vpop.eup %2037 }
 0xa00   : > { %v1053_v33 = vsel %vm402_vm4, %v2038_v32, 0.0 }
 0xa01   : > { %1054 = vadd.xlane.f32.xlu0 %v1053_v33 }
 0xa17   : > { %1059 = vrot.lane.b32.xlu0 %v2167_v10, %s2080_s16 }
 0xa2e   : > { %v989_v34 = vpop.f32.mrb[24].mxu0 }
 0xa2f   : > { %v995_v35 = vadd.f32 %v989_v34, %v834_v0  ;;  %v1912_v36 = vpop.f32.mrb[25].mxu0 }
 0xa30   : > { %v992_v37 = vpop.f32.mrb[26].mxu0 }
 0xa31   : > { %v1913_v38 = vpop.f32.mrb[27].mxu0 }
 0xa8e   : > { %v1055_v39 = vpop.xlane.xlu0 %1054 }
 0xa8f   : > { %2039 = vrcp.f32 %v1055_v39 }
 0xa92   : > { %v1060_v40 = vpop.permute.xlu0 %1059 }
 0xa93   : > { %v1065_v41 = vsel %vm420_vm5, %v1060_v40, 0 }
 0xa94   : > { %1921 = vmatpush3.bf16.msra.mxu0 %v1065_v41 }
 0xa95   : > { %1932 = vmatprep.subr.bf16.mxu0 %v2063_v1 }
 0xa99   : > { %v2040_v42 = vpop.eup %2039 }
 0xa9a   : > { %v1057_v43 = vmul.f32 %v2040_v42, %v2038_v32 }
 0xa9c   : > { %v1058_v45 = vpack.c.bf16 %v1057_v43, %v1057_v43 }
 0xa9e   : > { %1923 = vmatmul.mubr.msk.bf16.vlgmr.msra.gmra.mrb[28].mxu0 %vm402_vm4, %v1058_v45 }
 0xa9f   : > { %1933 = vmatpush3.bf16.xpose.msra.mxu0 %v1165_v46  ;;  %1934 = vmatprep.mubr.msk.bf16.mxu0 %vm2064_vm0, %v2063_v1 }
 0xaa0   : > { %1944 = vmatprep.subr.bf16.mxu0 %v2063_v1 }
 0xaa6   : > { %1935 = vmatmul.mubr.msk.bf16.vlgmr.msra.gmra.mrb[32].mxu0 %vm354_vm2, %v1158_v47 }
 0xaa7   : > { %1946 = vmatprep.mubr.msk.bf16.mxu0 %vm2064_vm0, %v2063_v1  ;;  %1945 = vmatpush3.bf16.msra.mxu0 %v1275_v22 }
 0xaa8   : > { %1956 = vmatprep.subr.bf16.mxu0 %v2063_v1 }
 0xb71   : > { %v1101_v50 = vpop.f32.mrb[28].mxu0 }
 0xb72   : > { %v1107_v51 = vpack.c.bf16 %v1101_v50, %v1101_v50  ;;  %v1924_v52 = vpop.f32.mrb[29].mxu0 }
 0xb73   : > { %v1104_v53 = vpop.f32.mrb[30].mxu0  ;;  %v1772_v52 = vld [vmem:[%s2395_s3 + $0xc] sm:$0x3] }
 0xb74   : > { %v1925_v54 = vpop.f32.mrb[31].mxu0  ;;  %1929 = vmatmul.mubr.msk.bf16.vlgmr.msra.gmra.mrb[28].mxu1 %vm354_vm2, %v1107_v51  ;;  %v1436_v53 = vsel %vm584_vm6, %v1772_v52, 0 }
 0xb75   : > { %1940 = vmatprep.mubr.msk.bf16.mxu1 %vm2064_vm0, %v2063_v1 }
 0xb79   : > { %v1201_v55 = vpop.f32.mrb[32].mxu0 }
 0xb7a   : > { %v1207_v56 = vsel %vm2185_vm3, %v1201_v55, -1.767767e+19  ;;  %v1936_v57 = vpop.f32.mrb[33].mxu0 }
 0xb7b   : > { %v1204_v58 = vpop.f32.mrb[34].mxu0  ;;  %v1208_v59 = vsel %vm402_vm4, %v1207_v56, -inf }
 0xb7c   : > { %1209 = vmax.xlane.f32.xlu0 %v1208_v59  ;;  %v1937_v60 = vpop.f32.mrb[35].mxu0 }
 0xb92   : > { %1220 = vrot.lane.b32.xlu0 %v2167_v10, %s2081_s19 }
 0xb96   : > { %1318 = vrot.lane.b32.xlu0 %v2169_v12, %s2082_s20  ;;  %s273_s20 = scalar_lea.vmem %s2399_s7, %s1741_s30 }
 0xc09   : > { %v1210_v61 = vpop.xlane.xlu0 %1209 }
 0xc0a   : > { %v1211_v62 = vsub.f32 %v1207_v56, %v1210_v61 }
 0xc0c   : > { %v1212_v63 = vmul.f32 1.442695, %v1211_v62 }
 0xc0d   : > { %v1221_v0 = vpop.permute.xlu0 %1220 }
 0xc0e   : > { %2041 = vpow2.f32 %v1212_v63  ;;  %v1226_v2 = vsel %vm420_vm5, %v1221_v0, 0 }
 0xc0f   : > { %1939 = vmatpush3.bf16.msra.mxu1 %v1226_v2 }
 0xc10   : > { %1950 = vmatprep.subr.bf16.mxu1 %v2063_v1 }
 0xc11   : > { %v1319_v19 = vpop.permute.xlu0 %1318 }
 0xc18   : > { %v2042_v4 = vpop.eup %2041 }
 0xc19   : > { %v1214_v5 = vsel %vm402_vm4, %v2042_v4, 0.0 }
 0xc1a   : > { %1215 = vadd.xlane.f32.xlu1 %v1214_v5 }
 0xc2b   : > { %1320 = vrot.lane.b32.xlu1 %v2167_v10, %s2083_s21 }
 0xc47   : > { %v1150_v6 = vpop.f32.mrb[28].mxu1 }
 0xc48   : > { %v1156_v7 = vadd.f32 %v1150_v6, %v995_v35  ;;  %v1930_v8 = vpop.f32.mrb[29].mxu1 }
 0xc49   : > { %v1153_v9 = vpop.f32.mrb[30].mxu1  ;;  %v1776_v8 = vld [vmem:[%s2395_s3 + $0xe] sm:$0x3] }
 0xc4a   : > { %v1931_v11 = vpop.f32.mrb[31].mxu1  ;;  %v1597_v9 = vsel %vm584_vm6, %v1776_v8, 0 }
 0xca7   : > { %v1216_v13 = vpop.xlane.xlu1 %1215 }
 0xca8   : > { %2043 = vrcp.f32 %v1216_v13 }
 0xcab   : > { %v1321_v16 = vpop.permute.xlu1 %1320 }
 0xcac   : > { %v1326_v18 = vsel %vm354_vm2, %v1321_v16, 0 }
 0xcb2   : > { %v2044_v14 = vpop.eup %2043 }
 0xcb3   : > { %v1218_v15 = vmul.f32 %v2044_v14, %v2042_v4 }
 0xcb5   : > { %v1219_v17 = vpack.c.bf16 %v1218_v15, %v1218_v15 }
 0xcb7   : > { %1941 = vmatmul.mubr.msk.bf16.vlgmr.msra.gmra.mrb[32].mxu1 %vm402_vm4, %v1219_v17 }
 0xcb8   : > { %1951 = vmatpush3.bf16.xpose.msra.mxu1 %v1326_v18  ;;  %1952 = vmatprep.mubr.msk.bf16.mxu1 %vm2064_vm0, %v2063_v1 }
 0xcb9   : > { %1962 = vmatprep.subr.bf16.mxu1 %v2063_v1 }
 0xcbf   : > { %1953 = vmatmul.mubr.msk.bf16.vlgmr.msra.gmra.mrb[36].mxu1 %vm354_vm2, %v1319_v19 }
 0xcc0   : > { %1964 = vmatprep.mubr.msk.bf16.mxu1 %vm2064_vm0, %v2063_v1  ;;  %1963 = vmatpush3.bf16.msra.mxu1 %v1436_v53 }
 0xcc1   : > { %1974 = vmatprep.subr.bf16.mxu1 %v2063_v1 }
 0xd8a   : > { %v1262_v23 = vpop.f32.mrb[32].mxu1 }
 0xd8b   : > { %v1268_v24 = vpack.c.bf16 %v1262_v23, %v1262_v23  ;;  %v1942_v25 = vpop.f32.mrb[33].mxu1 }
 0xd8c   : > { %v1265_v26 = vpop.f32.mrb[34].mxu1 }
 0xd8d   : > { %v1943_v27 = vpop.f32.mrb[35].mxu1  ;;  %1947 = vmatmul.mubr.msk.bf16.vlgmr.msra.gmra.mrb[36].mxu0 %vm354_vm2, %v1268_v24 }
 0xd8e   : > { %1958 = vmatprep.mubr.msk.bf16.mxu0 %vm2064_vm0, %v2063_v1  ;;  %v1778_v27 = vld [vmem:[%s2396_s4] ss:$0 sm:$0xff] }
 0xd92   : > { %v1362_v28 = vpop.f32.mrb[36].mxu1 }
 0xd93   : > { %v1368_v29 = vsel %vm2185_vm3, %v1362_v28, -1.767767e+19  ;;  %v1954_v30 = vpop.f32.mrb[37].mxu1 }
 0xd94   : > { %v1365_v31 = vpop.f32.mrb[38].mxu1  ;;  %v1369_v32 = vsel %vm402_vm4, %v1368_v29, -inf  ;;  %v1648_v30 = vunpack.c.l.bf16 %v2158_v3 }
 0xd95   : > { %1370 = vmax.xlane.f32.xlu1 %v1369_v32  ;;  %v1955_v33 = vpop.f32.mrb[39].mxu1 }
 0xda6   : > { %1481 = vrot.lane.b32.xlu1 %v2167_v10, %s2084_s26 }
 0xdaa   : > { %1479 = vrot.lane.b32.xlu1 %v2169_v12, %s2085_s27 }
 0xe22   : > { %v1371_v34 = vpop.xlane.xlu1 %1370 }
 0xe23   : > { %v1372_v35 = vsub.f32 %v1368_v29, %v1371_v34 }
 0xe25   : > { %v1373_v36 = vmul.f32 1.442695, %v1372_v35 }
 0xe26   : > { %v1482_v48 = vpop.permute.xlu1 %1481 }
 0xe27   : > { %2045 = vpow2.f32 %v1373_v36  ;;  %v1487_v50 = vsel %vm354_vm2, %v1482_v48, 0 }
 0xe2a   : > { %v1480_v51 = vpop.permute.xlu1 %1479 }
 0xe31   : > { %v2046_v37 = vpop.eup %2045 }
 0xe32   : > { %v1375_v38 = vsel %vm402_vm4, %v2046_v37, 0.0 }
 0xe33   : > { %1376 = vadd.xlane.f32.xlu0 %v1375_v38 }
 0xe49   : > { %1381 = vrot.lane.b32.xlu0 %v2167_v10, %s2086_s28 }
 0xe60   : > { %v1311_v39 = vpop.f32.mrb[36].mxu0 }
 0xe61   : > { %v1317_v40 = vadd.f32 %v1311_v39, %v1156_v7  ;;  %v1948_v41 = vpop.f32.mrb[37].mxu0 }
 0xe62   : > { %v1314_v42 = vpop.f32.mrb[38].mxu0 }
 0xe63   : > { %v1949_v43 = vpop.f32.mrb[39].mxu0 }
 0xec0   : > { %v1377_v44 = vpop.xlane.xlu0 %1376 }
 0xec1   : > { %2047 = vrcp.f32 %v1377_v44  ;;  %v1779_v44 = vld [vmem:[%s2397_s5] ss:$0 sm:$0xff] }
 0xec4   : > { %v1382_v45 = vpop.permute.xlu0 %1381 }
 0xec5   : > { %v1387_v12 = vsel %vm420_vm5, %v1382_v45, 0 }
 0xec6   : > { %1957 = vmatpush3.bf16.msra.mxu0 %v1387_v12  ;;  %v1780_v12 = vld [vmem:[%s2398_s6] ss:$0 sm:$0xff] }
 0xec7   : > { %1968 = vmatprep.subr.bf16.mxu0 %v2063_v1 }
 0xecb   : > { %v2048_v46 = vpop.eup %2047 }
 0xecc   : > { %v1379_v47 = vmul.f32 %v2048_v46, %v2046_v37 }
 0xece   : > { %v1380_v49 = vpack.c.bf16 %v1379_v47, %v1379_v47 }
 0xed0   : > { %1959 = vmatmul.mubr.msk.bf16.vlgmr.msra.gmra.mrb[40].mxu0 %vm402_vm4, %v1380_v49 }
 0xed1   : > { %1969 = vmatpush3.bf16.xpose.msra.mxu0 %v1487_v50  ;;  %1970 = vmatprep.mubr.msk.bf16.mxu0 %vm2064_vm0, %v2063_v1 }
 0xed2   : > { %1980 = vmatprep.subr.bf16.mxu0 %v2063_v1 }
 0xed8   : > { %1971 = vmatmul.mubr.msk.bf16.vlgmr.msra.gmra.mrb[44].mxu0 %vm354_vm2, %v1480_v51 }
 0xed9   : > { %1982 = vmatprep.mubr.msk.bf16.mxu0 %vm2064_vm0, %v2063_v1  ;;  %1981 = vmatpush3.bf16.msra.mxu0 %v1597_v9 }
 0xfa3   : > { %v1423_v54 = vpop.f32.mrb[40].mxu0 }
 0xfa4   : > { %v1429_v55 = vpack.c.bf16 %v1423_v54, %v1423_v54  ;;  %v1960_v56 = vpop.f32.mrb[41].mxu0 }
 0xfa5   : > { %v1426_v57 = vpop.f32.mrb[42].mxu0 }
 0xfa6   : > { %v1961_v58 = vpop.f32.mrb[43].mxu0  ;;  %1965 = vmatmul.mubr.msk.bf16.vlgmr.msra.gmra.mrb[40].mxu1 %vm354_vm2, %v1429_v55 }
 0xfa7   : > { %1976 = vmatprep.mubr.msk.bf16.mxu1 %vm2064_vm0, %v2063_v1 }
 0xfab   : > { %v1523_v59 = vpop.f32.mrb[44].mxu0 }
 0xfac   : > { %v1529_v60 = vsel %vm2185_vm3, %v1523_v59, -1.767767e+19  ;;  %v1972_v61 = vpop.f32.mrb[45].mxu0 }
 0xfad   : > { %v1526_v62 = vpop.f32.mrb[46].mxu0  ;;  %v1530_v63 = vsel %vm402_vm4, %v1529_v60, -inf }
 0xfae   : > { %1531 = vmax.xlane.f32.xlu0 %v1530_v63  ;;  %v1973_v0 = vpop.f32.mrb[47].mxu0 }
 0xfc4   : > { %1542 = vrot.lane.b32.xlu0 %v2167_v10, %s2087_s9 }
0x103b   : > { %v1532_v2 = vpop.xlane.xlu0 %1531 }
0x103c   : > { %v1533_v4 = vsub.f32 %v1529_v60, %v1532_v2 }
0x103e   : > { %v1534_v5 = vmul.f32 1.442695, %v1533_v4 }
0x103f   : > { %v1543_v6 = vpop.permute.xlu0 %1542 }
0x1040   : > { %2049 = vpow2.f32 %v1534_v5  ;;  %v1548_v1 = vsel %vm420_vm5, %v1543_v6, 0 }
0x1041   : > { %1975 = vmatpush3.bf16.msra.mxu1 %v1548_v1 }
0x104a   : > { %v2050_v7 = vpop.eup %2049 }
0x104b   : > { %v1536_v21 = vsel %vm402_vm4, %v2050_v7, 0.0 }
0x104c   : > { %1537 = vadd.xlane.f32.xlu1 %v1536_v21 }
0x1079   : > { %v1472_v10 = vpop.f32.mrb[40].mxu1 }
0x107a   : > { %v1478_v11 = vadd.f32 %v1472_v10, %v1317_v40  ;;  %v1966_v13 = vpop.f32.mrb[41].mxu1 }
0x107b   : > { %v1475_v14 = vpop.f32.mrb[42].mxu1 }
0x107c   : > { %v1967_v15 = vpop.f32.mrb[43].mxu1 }
0x10d9   : > { %v1538_v16 = vpop.xlane.xlu1 %1537 }
0x10da   : > { %2051 = vrcp.f32 %v1538_v16 }
0x10e4   : > { %v2052_v17 = vpop.eup %2051 }
0x10e5   : > { %v1540_v18 = vmul.f32 %v2052_v17, %v2050_v7 }
0x10e7   : > { %v1541_v19 = vpack.c.bf16 %v1540_v18, %v1540_v18 }
0x10e9   : > { %1977 = vmatmul.mubr.msk.bf16.vlgmr.msra.gmra.mrb[44].mxu1 %vm402_vm4, %v1541_v19 }
0x11bc   : > { %v1584_v20 = vpop.f32.mrb[44].mxu1 }
0x11bd   : > { %v1590_v22 = vpack.c.bf16 %v1584_v20, %v1584_v20  ;;  %v1978_v23 = vpop.f32.mrb[45].mxu1 }
0x11be   : > { %v1587_v24 = vpop.f32.mrb[46].mxu1 }
0x11bf   : > { %v1979_v25 = vpop.f32.mrb[47].mxu1  ;;  %1983 = vmatmul.mubr.msk.bf16.vlgmr.msra.gmra.mrb[48].mxu0 %vm354_vm2, %v1590_v22 }
0x1292   : > { %v1633_v26 = vpop.f32.mrb[48].mxu0 }
0x1293   : > { %v1639_v28 = vadd.f32 %v1633_v26, %v1478_v11  ;;  %v1984_v29 = vpop.f32.mrb[49].mxu0 }
0x1294   : > { %v1636_v31 = vpop.f32.mrb[50].mxu0 }
0x1295   : > { %v1647_v32 = vadd.f32 %v1778_v27, %v1639_v28  ;;  %v1985_v33 = vpop.f32.mrb[51].mxu0 }
0x1297   : > { %v1649_v34 = vadd.f32 %v1648_v30, %v1647_v32 }
0x1299   : > { %v1650_v35 = vsel %vm299_vm1, %v1649_v34, 0.0 }
0x129a   : > { %1651 = vadd.xlane.f32.xlu1 %v1650_v35 }
0x1327   : > { %v1652_v36 = vpop.xlane.xlu1 %1651 }
0x1328   : > { %v1654_v37 = vmul.f32 0.03125, %v1652_v36 }
0x132a   : > { %v1655_v38 = vsub.f32 %v1649_v34, %v1654_v37 }
0x132c   : > { %v1656_v39 = vmul.f32 %v1655_v38, %v1655_v38 }
0x132e   : > { %v1657_v40 = vsel %vm299_vm1, %v1656_v39, 0.0 }
0x132f   : > { %1658 = vadd.xlane.f32.xlu1 %v1657_v40 }
0x13bc   : > { %v1659_v41 = vpop.xlane.xlu1 %1658 }
0x13bd   : > { %v1660_v42 = vmul.f32 0.03125, %v1659_v41 }
0x13bf   : > { %v1661_v43 = vadd.f32 1e-05, %v1660_v42 }
0x13c1   : > { %2053 = vrsqrt.f32 %v1661_v43 }
0x13cb   : > { %v2054_v3 = vpop.eup %2053 }
0x13cc   : > { %v1663_v45 = vmul.f32 %v2054_v3, %v1655_v38 }
0x13ce   : > { %v1671_v46 = vmul.f32 %v1779_v44, %v1663_v45 }
0x13d0   : > { %v1679_v47 = vadd.f32 %v1780_v12, %v1671_v46 }
0x13d2   : > { %v1680_v48 = vpack.c.bf16 %v1679_v47, %v1679_v47 }
0x13d4   : > { %1682 = vst.msk [vmem:[%s273_s20] sm:$0xf] %vm1681_vm7, %v1680_v48 }
0x13d5 PF: > { %s17_s24 = sadd.s32 1, %s2061_s24  }
0x13d6   : > { %p14_p4 = scmp.ge.s32.totalorder %s17_s24, 4  }
0x13d8   :  { %16 = sbr.rel (!%p14_p4) target bundleno = 1 (0x1), region = 85 }

</bundles_post_ra>
